<compile_context>
chip_gen: v6e
topology: v6e:2x2x1
jax: 0.10.0
libtpu: 0.0.40
codegen_flags: <defaults>
</compile_context>

<pallas_src>
import jax
import jax.numpy as jnp
from jax.experimental import pallas as pl
from jax.experimental.pallas import tpu as pltpu


READOUT_PRIMITIVES = ("global_mean", "global_max", "global_sum")
# TODO(synk): parametric READOUT_OPS entries (global_att / set2set /
# global_sort) need learned sub-modules; only the non-parametric global
# pooling primitives are implemented here.


# ----------------------------- Pallas kernel -----------------------------
def _readout_mixed_kernel(w_ref, brow_ref, bcol_ref, x_ref, o_ref,
                          acc_sum, acc_max, acc_cnt):
    k = pl.program_id(1)  # node-tile index (reduction axis)

    @pl.when(k == 0)
    def _init():
        acc_sum[...] = jnp.zeros_like(acc_sum)
        acc_cnt[...] = jnp.zeros_like(acc_cnt)
        acc_max[...] = jnp.full_like(acc_max, -jnp.inf)

    b_pad = acc_sum.shape[0]
    tn = x_ref.shape[0]

    x_bf16 = x_ref[...]                          # [tn, th] bf16 (MXU operand)
    xf = x_bf16.astype(jnp.float32)              # f32 for the VPU max path
    brow = brow_ref[...]                         # [1, tn] int32 (pad nodes = -1)
    bcol = bcol_ref[...]                         # [tn, 1] int32 (pad nodes = -1)

    # ---- segment sum / count: one-hot matmul on the MXU (bf16 x bf16 -> f32)
    graph_ids = jax.lax.broadcasted_iota(jnp.int32, (b_pad, tn), 0)
    onehot_f32 = (graph_ids == brow).astype(jnp.float32)          # [b_pad, tn]
    acc_sum[...] += jnp.dot(onehot_f32.astype(jnp.bfloat16), x_bf16,
                            preferred_element_type=jnp.float32)
    acc_cnt[...] += jnp.sum(onehot_f32, axis=1, keepdims=True)    # [b_pad, 1]

    # ---- segment max: masked f32 max per graph (small, static graph count)
    neg_inf = jnp.float32(-jnp.inf)
    for b in range(b_pad):
        node_mask = bcol == b                                     # [tn, 1]
        m_b = jnp.max(jnp.where(node_mask, xf, neg_inf),
                      axis=0, keepdims=True)                      # [1, th]
        cur = acc_max[pl.ds(b, 1), :]
        acc_max[pl.ds(b, 1), :] = jnp.maximum(cur, m_b)

    @pl.when(k == pl.num_programs(1) - 1)
    def _finalize():
        cnt = acc_cnt[...]                                        # [b_pad, 1]
        ssum = acc_sum[...]
        mean = ssum / jnp.maximum(cnt, 1.0)
        mx = jnp.where(cnt > 0.0, acc_max[...], 0.0)              # empty/pad graphs -> 0
        w_mean = w_ref[0]
        w_max = w_ref[1]
        w_sum = w_ref[2]
        o_ref[...] = (w_mean * mean + w_max * mx + w_sum * ssum).astype(o_ref.dtype)


# ------------------------------- wrapper ----------------------------------
def _round_up(v, m):
    return ((v + m - 1) // m) * m


def readout_mixed_pallas(x, batch, weights, num_graphs, *,
                         node_tile=128, feat_tile=128):
    """Weighted mix of global_mean/global_max/global_sum readouts via Pallas."""
    n, h = x.shape
    n_pad = _round_up(max(n, 1), node_tile)
    h_pad = _round_up(max(h, 1), feat_tile)
    b_pad = _round_up(max(int(num_graphs), 1), 8)

    batch = batch.astype(jnp.int32)
    # bf16 features (halved HBM/VMEM traffic, MXU-friendly); pad with zeros.
    x_p = jnp.zeros((n_pad, h_pad), jnp.bfloat16).at[:n, :h].set(
        x.astype(jnp.bfloat16))
    # batch ids in both orientations (row for the one-hot, col for masks);
    # padded nodes get id -1 so they never match any graph.
    brow = jnp.full((1, n_pad), -1, jnp.int32).at[0, :n].set(batch)
    bcol = jnp.full((n_pad, 1), -1, jnp.int32).at[:n, 0].set(batch)
    w = weights.astype(jnp.float32)

    grid = (h_pad // feat_tile, n_pad // node_tile)
    out = pl.pallas_call(
        _readout_mixed_kernel,
        out_shape=jax.ShapeDtypeStruct((b_pad, h_pad), jnp.float32),
        grid_spec=pltpu.PrefetchScalarGridSpec(
            num_scalar_prefetch=0,
            grid=grid,
            in_specs=[
                pl.BlockSpec(memory_space=pltpu.MemorySpace.SMEM),          # weights [K]
                pl.BlockSpec((1, node_tile), lambda j, k: (0, k)),          # batch row
                pl.BlockSpec((node_tile, 1), lambda j, k: (k, 0)),          # batch col
                pl.BlockSpec((node_tile, feat_tile), lambda j, k: (k, j)),  # x tile
            ],
            out_specs=pl.BlockSpec((b_pad, feat_tile), lambda j, k: (0, j)),
            scratch_shapes=[
                pltpu.VMEM((b_pad, feat_tile), jnp.float32),  # acc_sum
                pltpu.VMEM((b_pad, feat_tile), jnp.float32),  # acc_max
                pltpu.VMEM((b_pad, 1), jnp.float32),          # acc_cnt
            ],
        ),
        compiler_params=pltpu.CompilerParams(
            dimension_semantics=("parallel", "arbitrary"),
            vmem_limit_bytes=32 * 1024 * 1024,
        ),
    )(w, brow, bcol, x_p)
    return out[:num_graphs, :h]


class ReadoutMixedOpPallas:
    """JAX/Pallas port of ReadoutMixedOp(hidden)."""

    def __init__(self, hidden):
        self.hidden = hidden
        self.num_primitives = len(READOUT_PRIMITIVES)

    def __call__(self, x, batch, weights, num_graphs):
        assert weights.shape[0] == self.num_primitives
        return readout_mixed_pallas(x, batch, weights, num_graphs)


# --------------------------------- main ------------------------------------
if __name__ == "__main__":
    key = jax.random.PRNGKey(0)
    k_x, k_w = jax.random.split(key)

    num_graphs, nodes_per_graph, hidden = 4, 12, 32
    num_nodes = num_graphs * nodes_per_graph

    x = jax.random.normal(k_x, (num_nodes, hidden), dtype=jnp.float32)
    batch = jnp.repeat(jnp.arange(num_graphs, dtype=jnp.int32), nodes_per_graph)
    # architecture weights (softmax over alphas), one per readout primitive
    weights = jax.nn.softmax(
        jax.random.normal(k_w, (len(READOUT_PRIMITIVES),), dtype=jnp.float32))

    op = ReadoutMixedOpPallas(hidden)
    out = jax.block_until_ready(op(x, batch, weights, num_graphs))

    # pure-JAX reference (same bf16 quantization of x as the kernel uses)
    xq = x.astype(jnp.bfloat16).astype(jnp.float32)
    onehot = (batch[None, :] == jnp.arange(num_graphs)[:, None]).astype(jnp.float32)
    seg_sum = onehot @ xq
    cnt = onehot.sum(axis=1, keepdims=True)
    seg_mean = seg_sum / cnt
    seg_max = jnp.max(
        jnp.where(onehot[:, :, None] > 0, xq[None, :, :], -jnp.inf), axis=1)
    ref = weights[0] * seg_mean + weights[1] * seg_max + weights[2] * seg_sum

    assert out.shape == (num_graphs, hidden)
    assert jnp.allclose(out, ref, atol=1e-4, rtol=1e-4), \
        float(jnp.max(jnp.abs(out - ref)))

    print("KERNEL_OK")
</pallas_src>

<mosaic_0001>
module attributes {stable_mosaic.version = 11 : i64} {
  func.func @_readout_mixed_kernel(%arg0: i32, %arg1: i32, %arg2: memref<3xf32, #tpu.memory_space<smem>>, %arg3: memref<1x128xi32, #tpu.memory_space<vmem>>, %arg4: memref<128x1xi32, #tpu.memory_space<vmem>>, %arg5: memref<128x128xbf16, #tpu.memory_space<vmem>>, %arg6: memref<8x128xf32, #tpu.memory_space<vmem>>, %arg7: memref<8x128xf32, #tpu.memory_space<vmem>>, %arg8: memref<8x128xf32, #tpu.memory_space<vmem>>, %arg9: memref<8x1xf32, #tpu.memory_space<vmem>>) attributes {dimension_semantics = [#tpu.dimension_semantics<parallel>, #tpu.dimension_semantics<arbitrary>], iteration_bounds = array<i64: 1, 1>, scalar_prefetch = 0 : i64, scratch_operands = 3 : i64, tpu.core_type = #tpu.core_type<tc>, window_params = [{transform_indices = @transform_0, window_bounds = array<i64: 3>}, {transform_indices = @transform_1, window_bounds = array<i64: 1, 128>}, {transform_indices = @transform_2, window_bounds = array<i64: 128, 1>}, {transform_indices = @transform_3, window_bounds = array<i64: 128, 128>}, {transform_indices = @transform_4, window_bounds = array<i64: 8, 128>}]} {
    %c0_i32 = arith.constant 0 : i32
    %0 = arith.cmpi eq, %arg1, %c0_i32 : i32
    %1 = arith.extui %0 : i1 to i32
    %c0_i32_0 = arith.constant 0 : i32
    %2 = arith.cmpi ne, %1, %c0_i32_0 : i32
    scf.if %2 {
      %cst_59 = arith.constant 0.000000e+00 : f32
      %113 = vector.broadcast %cst_59 : f32 to vector<8x128xf32>
      %c0_60 = arith.constant 0 : index
      %c0_61 = arith.constant 0 : index
      %114 = vector.load %arg7[%c0_60, %c0_61] : memref<8x128xf32, #tpu.memory_space<vmem>>, vector<8x128xf32>
      tpu.vector_store %arg7[%c0_60, %c0_61], %113 {strides = array<i32>} : memref<8x128xf32, #tpu.memory_space<vmem>>, vector<8x128xf32>,
      %cst_62 = arith.constant 0.000000e+00 : f32
      %115 = vector.broadcast %cst_62 : f32 to vector<8x1xf32>
      %c0_63 = arith.constant 0 : index
      %c0_64 = arith.constant 0 : index
      %116 = vector.load %arg9[%c0_63, %c0_64] : memref<8x1xf32, #tpu.memory_space<vmem>>, vector<8x1xf32>
      tpu.vector_store %arg9[%c0_63, %c0_64], %115 {strides = array<i32>} : memref<8x1xf32, #tpu.memory_space<vmem>>, vector<8x1xf32>,
      %cst_65 = arith.constant 0xFF800000 : f32
      %117 = vector.broadcast %cst_65 : f32 to vector<8x128xf32>
      %c0_66 = arith.constant 0 : index
      %c0_67 = arith.constant 0 : index
      %118 = vector.load %arg8[%c0_66, %c0_67] : memref<8x128xf32, #tpu.memory_space<vmem>>, vector<8x128xf32>
      tpu.vector_store %arg8[%c0_66, %c0_67], %117 {strides = array<i32>} : memref<8x128xf32, #tpu.memory_space<vmem>>, vector<8x128xf32>,
    } else {
    }
    %c0 = arith.constant 0 : index
    %c0_1 = arith.constant 0 : index
    %3 = vector.load %arg5[%c0, %c0_1] : memref<128x128xbf16, #tpu.memory_space<vmem>>, vector<128x128xbf16>
    %4 = arith.extf %3 : vector<128x128xbf16> to vector<128x128xf32>
    %c0_2 = arith.constant 0 : index
    %c0_3 = arith.constant 0 : index
    %5 = vector.load %arg3[%c0_2, %c0_3] : memref<1x128xi32, #tpu.memory_space<vmem>>, vector<1x128xi32>
    %c0_4 = arith.constant 0 : index
    %c0_5 = arith.constant 0 : index
    %6 = vector.load %arg4[%c0_4, %c0_5] : memref<128x1xi32, #tpu.memory_space<vmem>>, vector<128x1xi32>
    %7 = tpu.iota {dimensions = array<i32: 0>} : vector<8x128xi32>
    %8 = vector.broadcast %5 : vector<1x128xi32> to vector<8x128xi32>
    %9 = arith.cmpi eq, %7, %8 : vector<8x128xi32>
    %10 = arith.extui %9 : vector<8x128xi1> to vector<8x128xi32>
    %11 = arith.sitofp %10 : vector<8x128xi32> to vector<8x128xf32>
    %c0_6 = arith.constant 0 : index
    %c0_7 = arith.constant 0 : index
    %12 = vector.load %arg7[%c0_6, %c0_7] : memref<8x128xf32, #tpu.memory_space<vmem>>, vector<8x128xf32>
    %13 = arith.truncf %11 : vector<8x128xf32> to vector<8x128xbf16>
    %cst = arith.constant dense<0.000000e+00> : vector<8x128xf32>
    %14 = tpu.matmul %13, %3, %cst {dimension_numbers = #tpu.dot_dimension_numbers<[1], [0], [0], [1], [0, 0, 1, 1], [], []>} : vector<8x128xbf16>, vector<128x128xbf16>, vector<8x128xf32> -> vector<8x128xf32>
    %15 = arith.addf %12, %14 : vector<8x128xf32>
    %c0_8 = arith.constant 0 : index
    %c0_9 = arith.constant 0 : index
    %16 = vector.load %arg7[%c0_8, %c0_9] : memref<8x128xf32, #tpu.memory_space<vmem>>, vector<8x128xf32>
    tpu.vector_store %arg7[%c0_8, %c0_9], %15 {strides = array<i32>} : memref<8x128xf32, #tpu.memory_space<vmem>>, vector<8x128xf32>,
    %c0_10 = arith.constant 0 : index
    %c0_11 = arith.constant 0 : index
    %17 = vector.load %arg9[%c0_10, %c0_11] : memref<8x1xf32, #tpu.memory_space<vmem>>, vector<8x1xf32>
    %cst_12 = arith.constant dense<0.000000e+00> : vector<8xf32>
    %18 = vector.multi_reduction <add>, %11, %cst_12 [1] : vector<8x128xf32> to vector<8xf32>
    %19 = vector.shape_cast %18 : vector<8xf32> to vector<8x1xf32>
    %20 = arith.addf %17, %19 : vector<8x1xf32>
    %c0_13 = arith.constant 0 : index
    %c0_14 = arith.constant 0 : index
    %21 = vector.load %arg9[%c0_13, %c0_14] : memref<8x1xf32, #tpu.memory_space<vmem>>, vector<8x1xf32>
    tpu.vector_store %arg9[%c0_13, %c0_14], %20 {strides = array<i32>} : memref<8x1xf32, #tpu.memory_space<vmem>>, vector<8x1xf32>,
    %c0_i32_15 = arith.constant 0 : i32
    %22 = vector.broadcast %c0_i32_15 : i32 to vector<128x1xi32>
    %23 = arith.cmpi eq, %6, %22 : vector<128x1xi32>
    %cst_16 = arith.constant 0xFF800000 : f32
    %24 = vector.shape_cast %23 : vector<128x1xi1> to vector<128x1xi1>
    %25 = vector.broadcast %24 : vector<128x1xi1> to vector<128x128xi1>
    %26 = vector.broadcast %cst_16 : f32 to vector<128x128xf32>
    %27 = arith.select %25, %4, %26 : vector<128x128xi1>, vector<128x128xf32>
    %cst_17 = arith.constant dense<0xFF800000> : vector<128xf32>
    %28 = vector.multi_reduction <maximumf>, %27, %cst_17 [0] : vector<128x128xf32> to vector<128xf32>
    %29 = vector.shape_cast %28 : vector<128xf32> to vector<1x128xf32>
    %c0_18 = arith.constant 0 : index
    %c0_19 = arith.constant 0 : index
    %30 = vector.load %arg8[%c0_18, %c0_19] : memref<8x128xf32, #tpu.memory_space<vmem>>, vector<1x128xf32>
    %31 = arith.maximumf %30, %29 : vector<1x128xf32>
    %c0_20 = arith.constant 0 : index
    %c0_21 = arith.constant 0 : index
    %32 = vector.load %arg8[%c0_20, %c0_21] : memref<8x128xf32, #tpu.memory_space<vmem>>, vector<1x128xf32>
    tpu.vector_store %arg8[%c0_20, %c0_21], %31 {strides = array<i32>} : memref<8x128xf32, #tpu.memory_space<vmem>>, vector<1x128xf32>,
    %c1_i32 = arith.constant 1 : i32
    %33 = vector.broadcast %c1_i32 : i32 to vector<128x1xi32>
    %34 = arith.cmpi eq, %6, %33 : vector<128x1xi32>
    %cst_22 = arith.constant 0xFF800000 : f32
    %35 = vector.shape_cast %34 : vector<128x1xi1> to vector<128x1xi1>
    %36 = vector.broadcast %35 : vector<128x1xi1> to vector<128x128xi1>
    %37 = vector.broadcast %cst_22 : f32 to vector<128x128xf32>
    %38 = arith.select %36, %4, %37 : vector<128x128xi1>, vector<128x128xf32>
    %cst_23 = arith.constant dense<0xFF800000> : vector<128xf32>
    %39 = vector.multi_reduction <maximumf>, %38, %cst_23 [0] : vector<128x128xf32> to vector<128xf32>
    %40 = vector.shape_cast %39 : vector<128xf32> to vector<1x128xf32>
    %c1 = arith.constant 1 : index
    %c0_24 = arith.constant 0 : index
    %41 = vector.load %arg8[%c1, %c0_24] : memref<8x128xf32, #tpu.memory_space<vmem>>, vector<1x128xf32>
    %42 = arith.maximumf %41, %40 : vector<1x128xf32>
    %c1_25 = arith.constant 1 : index
    %c0_26 = arith.constant 0 : index
    %43 = vector.load %arg8[%c1_25, %c0_26] : memref<8x128xf32, #tpu.memory_space<vmem>>, vector<1x128xf32>
    tpu.vector_store %arg8[%c1_25, %c0_26], %42 {strides = array<i32>} : memref<8x128xf32, #tpu.memory_space<vmem>>, vector<1x128xf32>,
    %c2_i32 = arith.constant 2 : i32
    %44 = vector.broadcast %c2_i32 : i32 to vector<128x1xi32>
    %45 = arith.cmpi eq, %6, %44 : vector<128x1xi32>
    %cst_27 = arith.constant 0xFF800000 : f32
    %46 = vector.shape_cast %45 : vector<128x1xi1> to vector<128x1xi1>
    %47 = vector.broadcast %46 : vector<128x1xi1> to vector<128x128xi1>
    %48 = vector.broadcast %cst_27 : f32 to vector<128x128xf32>
    %49 = arith.select %47, %4, %48 : vector<128x128xi1>, vector<128x128xf32>
    %cst_28 = arith.constant dense<0xFF800000> : vector<128xf32>
    %50 = vector.multi_reduction <maximumf>, %49, %cst_28 [0] : vector<128x128xf32> to vector<128xf32>
    %51 = vector.shape_cast %50 : vector<128xf32> to vector<1x128xf32>
    %c2 = arith.constant 2 : index
    %c0_29 = arith.constant 0 : index
    %52 = vector.load %arg8[%c2, %c0_29] : memref<8x128xf32, #tpu.memory_space<vmem>>, vector<1x128xf32>
    %53 = arith.maximumf %52, %51 : vector<1x128xf32>
    %c2_30 = arith.constant 2 : index
    %c0_31 = arith.constant 0 : index
    %54 = vector.load %arg8[%c2_30, %c0_31] : memref<8x128xf32, #tpu.memory_space<vmem>>, vector<1x128xf32>
    tpu.vector_store %arg8[%c2_30, %c0_31], %53 {strides = array<i32>} : memref<8x128xf32, #tpu.memory_space<vmem>>, vector<1x128xf32>,
    %c3_i32 = arith.constant 3 : i32
    %55 = vector.broadcast %c3_i32 : i32 to vector<128x1xi32>
    %56 = arith.cmpi eq, %6, %55 : vector<128x1xi32>
    %cst_32 = arith.constant 0xFF800000 : f32
    %57 = vector.shape_cast %56 : vector<128x1xi1> to vector<128x1xi1>
    %58 = vector.broadcast %57 : vector<128x1xi1> to vector<128x128xi1>
    %59 = vector.broadcast %cst_32 : f32 to vector<128x128xf32>
    %60 = arith.select %58, %4, %59 : vector<128x128xi1>, vector<128x128xf32>
    %cst_33 = arith.constant dense<0xFF800000> : vector<128xf32>
    %61 = vector.multi_reduction <maximumf>, %60, %cst_33 [0] : vector<128x128xf32> to vector<128xf32>
    %62 = vector.shape_cast %61 : vector<128xf32> to vector<1x128xf32>
    %c3 = arith.constant 3 : index
    %c0_34 = arith.constant 0 : index
    %63 = vector.load %arg8[%c3, %c0_34] : memref<8x128xf32, #tpu.memory_space<vmem>>, vector<1x128xf32>
    %64 = arith.maximumf %63, %62 : vector<1x128xf32>
    %c3_35 = arith.constant 3 : index
    %c0_36 = arith.constant 0 : index
    %65 = vector.load %arg8[%c3_35, %c0_36] : memref<8x128xf32, #tpu.memory_space<vmem>>, vector<1x128xf32>
    tpu.vector_store %arg8[%c3_35, %c0_36], %64 {strides = array<i32>} : memref<8x128xf32, #tpu.memory_space<vmem>>, vector<1x128xf32>,
    %c4_i32 = arith.constant 4 : i32
    %66 = vector.broadcast %c4_i32 : i32 to vector<128x1xi32>
    %67 = arith.cmpi eq, %6, %66 : vector<128x1xi32>
    %cst_37 = arith.constant 0xFF800000 : f32
    %68 = vector.shape_cast %67 : vector<128x1xi1> to vector<128x1xi1>
    %69 = vector.broadcast %68 : vector<128x1xi1> to vector<128x128xi1>
    %70 = vector.broadcast %cst_37 : f32 to vector<128x128xf32>
    %71 = arith.select %69, %4, %70 : vector<128x128xi1>, vector<128x128xf32>
    %cst_38 = arith.constant dense<0xFF800000> : vector<128xf32>
    %72 = vector.multi_reduction <maximumf>, %71, %cst_38 [0] : vector<128x128xf32> to vector<128xf32>
    %73 = vector.shape_cast %72 : vector<128xf32> to vector<1x128xf32>
    %c4 = arith.constant 4 : index
    %c0_39 = arith.constant 0 : index
    %74 = vector.load %arg8[%c4, %c0_39] : memref<8x128xf32, #tpu.memory_space<vmem>>, vector<1x128xf32>
    %75 = arith.maximumf %74, %73 : vector<1x128xf32>
    %c4_40 = arith.constant 4 : index
    %c0_41 = arith.constant 0 : index
    %76 = vector.load %arg8[%c4_40, %c0_41] : memref<8x128xf32, #tpu.memory_space<vmem>>, vector<1x128xf32>
    tpu.vector_store %arg8[%c4_40, %c0_41], %75 {strides = array<i32>} : memref<8x128xf32, #tpu.memory_space<vmem>>, vector<1x128xf32>,
    %c5_i32 = arith.constant 5 : i32
    %77 = vector.broadcast %c5_i32 : i32 to vector<128x1xi32>
    %78 = arith.cmpi eq, %6, %77 : vector<128x1xi32>
    %cst_42 = arith.constant 0xFF800000 : f32
    %79 = vector.shape_cast %78 : vector<128x1xi1> to vector<128x1xi1>
    %80 = vector.broadcast %79 : vector<128x1xi1> to vector<128x128xi1>
    %81 = vector.broadcast %cst_42 : f32 to vector<128x128xf32>
    %82 = arith.select %80, %4, %81 : vector<128x128xi1>, vector<128x128xf32>
    %cst_43 = arith.constant dense<0xFF800000> : vector<128xf32>
    %83 = vector.multi_reduction <maximumf>, %82, %cst_43 [0] : vector<128x128xf32> to vector<128xf32>
    %84 = vector.shape_cast %83 : vector<128xf32> to vector<1x128xf32>
    %c5 = arith.constant 5 : index
    %c0_44 = arith.constant 0 : index
    %85 = vector.load %arg8[%c5, %c0_44] : memref<8x128xf32, #tpu.memory_space<vmem>>, vector<1x128xf32>
    %86 = arith.maximumf %85, %84 : vector<1x128xf32>
    %c5_45 = arith.constant 5 : index
    %c0_46 = arith.constant 0 : index
    %87 = vector.load %arg8[%c5_45, %c0_46] : memref<8x128xf32, #tpu.memory_space<vmem>>, vector<1x128xf32>
    tpu.vector_store %arg8[%c5_45, %c0_46], %86 {strides = array<i32>} : memref<8x128xf32, #tpu.memory_space<vmem>>, vector<1x128xf32>,
    %c6_i32 = arith.constant 6 : i32
    %88 = vector.broadcast %c6_i32 : i32 to vector<128x1xi32>
    %89 = arith.cmpi eq, %6, %88 : vector<128x1xi32>
    %cst_47 = arith.constant 0xFF800000 : f32
    %90 = vector.shape_cast %89 : vector<128x1xi1> to vector<128x1xi1>
    %91 = vector.broadcast %90 : vector<128x1xi1> to vector<128x128xi1>
    %92 = vector.broadcast %cst_47 : f32 to vector<128x128xf32>
    %93 = arith.select %91, %4, %92 : vector<128x128xi1>, vector<128x128xf32>
    %cst_48 = arith.constant dense<0xFF800000> : vector<128xf32>
    %94 = vector.multi_reduction <maximumf>, %93, %cst_48 [0] : vector<128x128xf32> to vector<128xf32>
    %95 = vector.shape_cast %94 : vector<128xf32> to vector<1x128xf32>
    %c6 = arith.constant 6 : index
    %c0_49 = arith.constant 0 : index
    %96 = vector.load %arg8[%c6, %c0_49] : memref<8x128xf32, #tpu.memory_space<vmem>>, vector<1x128xf32>
    %97 = arith.maximumf %96, %95 : vector<1x128xf32>
    %c6_50 = arith.constant 6 : index
    %c0_51 = arith.constant 0 : index
    %98 = vector.load %arg8[%c6_50, %c0_51] : memref<8x128xf32, #tpu.memory_space<vmem>>, vector<1x128xf32>
    tpu.vector_store %arg8[%c6_50, %c0_51], %97 {strides = array<i32>} : memref<8x128xf32, #tpu.memory_space<vmem>>, vector<1x128xf32>,
    %c7_i32 = arith.constant 7 : i32
    %99 = vector.broadcast %c7_i32 : i32 to vector<128x1xi32>
    %100 = arith.cmpi eq, %6, %99 : vector<128x1xi32>
    %cst_52 = arith.constant 0xFF800000 : f32
    %101 = vector.shape_cast %100 : vector<128x1xi1> to vector<128x1xi1>
    %102 = vector.broadcast %101 : vector<128x1xi1> to vector<128x128xi1>
    %103 = vector.broadcast %cst_52 : f32 to vector<128x128xf32>
    %104 = arith.select %102, %4, %103 : vector<128x128xi1>, vector<128x128xf32>
    %cst_53 = arith.constant dense<0xFF800000> : vector<128xf32>
    %105 = vector.multi_reduction <maximumf>, %104, %cst_53 [0] : vector<128x128xf32> to vector<128xf32>
    %106 = vector.shape_cast %105 : vector<128xf32> to vector<1x128xf32>
    %c7 = arith.constant 7 : index
    %c0_54 = arith.constant 0 : index
    %107 = vector.load %arg8[%c7, %c0_54] : memref<8x128xf32, #tpu.memory_space<vmem>>, vector<1x128xf32>
    %108 = arith.maximumf %107, %106 : vector<1x128xf32>
    %c7_55 = arith.constant 7 : index
    %c0_56 = arith.constant 0 : index
    %109 = vector.load %arg8[%c7_55, %c0_56] : memref<8x128xf32, #tpu.memory_space<vmem>>, vector<1x128xf32>
    tpu.vector_store %arg8[%c7_55, %c0_56], %108 {strides = array<i32>} : memref<8x128xf32, #tpu.memory_space<vmem>>, vector<1x128xf32>,
    %c0_i32_57 = arith.constant 0 : i32
    %110 = arith.cmpi eq, %arg1, %c0_i32_57 : i32
    %111 = arith.extui %110 : i1 to i32
    %c0_i32_58 = arith.constant 0 : i32
    %112 = arith.cmpi ne, %111, %c0_i32_58 : i32
    scf.if %112 {
      %c0_59 = arith.constant 0 : index
      %c0_60 = arith.constant 0 : index
      %113 = vector.load %arg9[%c0_59, %c0_60] : memref<8x1xf32, #tpu.memory_space<vmem>>, vector<8x1xf32>
      %c0_61 = arith.constant 0 : index
      %c0_62 = arith.constant 0 : index
      %114 = vector.load %arg7[%c0_61, %c0_62] : memref<8x128xf32, #tpu.memory_space<vmem>>, vector<8x128xf32>
      %cst_63 = arith.constant 1.000000e+00 : f32
      %115 = vector.broadcast %cst_63 : f32 to vector<8x1xf32>
      %116 = arith.maximumf %113, %115 : vector<8x1xf32>
      %117 = vector.broadcast %116 : vector<8x1xf32> to vector<8x128xf32>
      %118 = arith.divf %114, %117 : vector<8x128xf32>
      %cst_64 = arith.constant 0.000000e+00 : f32
      %119 = vector.broadcast %cst_64 : f32 to vector<8x1xf32>
      %120 = arith.cmpf ogt, %113, %119 : vector<8x1xf32>
      %c0_65 = arith.constant 0 : index
      %c0_66 = arith.constant 0 : index
      %121 = vector.load %arg8[%c0_65, %c0_66] : memref<8x128xf32, #tpu.memory_space<vmem>>, vector<8x128xf32>
      %cst_67 = arith.constant 0.000000e+00 : f32
      %122 = vector.shape_cast %120 : vector<8x1xi1> to vector<8x1xi1>
      %123 = vector.broadcast %122 : vector<8x1xi1> to vector<8x128xi1>
      %124 = vector.broadcast %cst_67 : f32 to vector<8x128xf32>
      %125 = arith.select %123, %121, %124 : vector<8x128xi1>, vector<8x128xf32>
      %c0_68 = arith.constant 0 : index
      %126 = memref.load %arg2[%c0_68] : memref<3xf32, #tpu.memory_space<smem>>
      %c1_69 = arith.constant 1 : index
      %127 = memref.load %arg2[%c1_69] : memref<3xf32, #tpu.memory_space<smem>>
      %c2_70 = arith.constant 2 : index
      %128 = memref.load %arg2[%c2_70] : memref<3xf32, #tpu.memory_space<smem>>
      %129 = vector.broadcast %126 : f32 to vector<8x128xf32>
      %130 = arith.mulf %129, %118 : vector<8x128xf32>
      %131 = vector.broadcast %127 : f32 to vector<8x128xf32>
      %132 = arith.mulf %131, %125 : vector<8x128xf32>
      %133 = arith.addf %130, %132 : vector<8x128xf32>
      %134 = vector.broadcast %128 : f32 to vector<8x128xf32>
      %135 = arith.mulf %134, %114 : vector<8x128xf32>
      %136 = arith.addf %133, %135 : vector<8x128xf32>
      %c0_71 = arith.constant 0 : index
      %c0_72 = arith.constant 0 : index
      %137 = vector.load %arg6[%c0_71, %c0_72] : memref<8x128xf32, #tpu.memory_space<vmem>>, vector<8x128xf32>
      tpu.vector_store %arg6[%c0_71, %c0_72], %136 {strides = array<i32>} : memref<8x128xf32, #tpu.memory_space<vmem>>, vector<8x128xf32>,
    } else {
    }
    return
  }
  func.func @transform_0(%arg0: i32, %arg1: i32) -> i32 {
    %c0_i32 = arith.constant 0 : i32
    %c0_i32_0 = arith.constant 0 : i32
    return %c0_i32 : i32
  }
  func.func @transform_1(%arg0: i32, %arg1: i32) -> (i32, i32) {
    %c0_i32 = arith.constant 0 : i32
    %c0_i32_0 = arith.constant 0 : i32
    return %c0_i32, %arg1 : i32, i32
  }
  func.func @transform_2(%arg0: i32, %arg1: i32) -> (i32, i32) {
    %c0_i32 = arith.constant 0 : i32
    %c0_i32_0 = arith.constant 0 : i32
    return %arg1, %c0_i32 : i32, i32
  }
  func.func @transform_3(%arg0: i32, %arg1: i32) -> (i32, i32) {
    %c0_i32 = arith.constant 0 : i32
    return %arg1, %arg0 : i32, i32
  }
  func.func @transform_4(%arg0: i32, %arg1: i32) -> (i32, i32) {
    %c0_i32 = arith.constant 0 : i32
    %c0_i32_0 = arith.constant 0 : i32
    return %c0_i32, %arg0 : i32, i32
  }
}

</mosaic_0001>

<bundles_post_ra>
// kernel: tpu_custom_call.1
= control target key start
LH: loop header
LB: loop body
LE: loop exit
PB: predicated region body
PF: predicated region fallthrough
CT: control target
= control target key end

     0   :  { %9 = vsyncpa [#allocation7], 0  ;;  %s2302_s0 = inlined_call_operand.vmem [shape: f32[3], index: 0, kind: input, shape index: {}]   ;;  %s2303_s1 = inlined_call_operand.vmem [shape: s32[1,128], index: 1, kind: input, shape index: {}]   ;;  %s2304_s2 = inlined_call_operand.vmem [shape: s32[128,1], index: 2, kind: input, shape index: {}]   ;;  %s2305_s3 = inlined_call_operand.vmem [shape: bf16[128,128], index: 3, kind: input, shape index: {}]   ;;  %s2306_s4 = inlined_call_operand.hbm [shape: f32[8,128], index: 4, kind: output, shape index: {}]  }
   0x1   :  { %10 = vsyncpa [#allocation6], 0  ;;  %s17_s17 = sshll.u32 %s2302_s0, 4  ;;  %s18_s17 = int_to_ptr.vmem [resolvable:$true] %s17_s17 }
   0x2   :  { %s1414_s18 = scalar_lea.vmem %s18_s17, 16  ;;  %p1419_p1 = scmp.lt.s32.totalorder %s18_s17, %s18_s17 }
   0x3   :  { %p1415_p0 = scmp.ne.s32.totalorder %s18_s17, %s1414_s18  ;;  %p1420_p2 = scmp.lt.s32.totalorder %s1414_s18, %s1414_s18 }
   0x5   :  { %p1421_p3 = por %p1420_p2, %p1419_p1 }
   0x7   :  { %p1422_p4 = pnand %p1421_p3, %p1415_p0 }
   0x9   :  { %1425 = shalt.err (!%p1422_p4)
}
   0xa   :  { %s1450_s19 = smov [#allocation5]  }
   0xb   :  { %20 = dma.vmem_to_smem %s18_s17, 16, %s1450_s19, [#allocation7]  }
   0xc   :  { %1446 = dma.done.wait [#allocation7], 16  }
   0xd   :  { %1447 = vsyncadd [#allocation7], 4294967280 }
   0xe   :  { %30 = sfence }
   0xf   :  { %v1488_v0 = vld [vmem:[%s2304_s2 + $0x8] sm:$0xff]  ;;  %v89_v1 = vlaneseq  ;;  %v1493_v2 = vld [vmem:[%s2304_s2 + $0x10] sm:$0xff]  ;;  %v1451_v3 = vmov 0   ;;  %v1500_v4 = vld [vmem:[%s2303_s1] ss:$0 sm:$0xff]  ;;  %v1452_v8 = vmov 0.0  }
  0x10   :  { %1383 = vset.pattern.permute.xlu1 %v1451_v3  ;;  %vm197_vm0 = vcmp.eq.s32.totalorder %v1488_v0, 0  ;;  %vm198_vm1 = vcmp.eq.s32.totalorder %v1493_v2, 0  ;;  %1382 = vset.pattern.permute.xlu0 %v1451_v3  ;;  %v1510_v7 = vld [vmem:[%s2304_s2 + $0x18] sm:$0xff]  ;;  %v1524_v11 = vld [vmem:[%s2304_s2 + $0x20] sm:$0xff]  ;;  %v1531_v13 = vld [vmem:[%s2304_s2 + $0x28] sm:$0xff]  ;;  %vm333_vm14 = vcmp.eq.s32.totalorder %v1488_v0, 1 }
  0x11   :  { %v213_v5 = vsel %vm197_vm0, 1, %v1451_v3  ;;  %v1505_v6 = vshrl.u32 %v89_v1, 7  ;;  %1355 = vmatprep.subr.bf16.mxu0 %v1452_v8  ;;  %v214_v9 = vsel %vm198_vm1, 1, %v1451_v3  ;;  %vm199_vm3 = vcmp.eq.s32.totalorder %v1510_v7, 0  ;;  %v1538_v15 = vld [vmem:[%s2304_s2 + $0x30] sm:$0xff]  ;;  %v1545_v17 = vld [vmem:[%s2304_s2 + $0x38] sm:$0xff] }
  0x12   :  { %232 = vperm.xlu1 %1383, %v213_v5   ;;  %v215_v12 = vsel %vm199_vm3, 1, %v1451_v3  ;;  %vm200_vm4 = vcmp.eq.s32.totalorder %v1524_v11, 0  ;;  %vm201_vm5 = vcmp.eq.s32.totalorder %v1531_v13, 0  ;;  %vm202_vm6 = vcmp.eq.s32.totalorder %v1538_v15, 0  ;;  %v1550_v18 = vld [vmem:[%s2304_s2] sm:$0xff]  ;;  %v1563_v21 = vld [vmem:[%s2304_s2 + $0x68] sm:$0xff] }
  0x13   :  { %vm95_vm2 = vcmp.eq.s32.totalorder %v1505_v6, %v1500_v4  ;;  %v216_v14 = vsel %vm200_vm4, 1, %v1451_v3  ;;  %v217_v16 = vsel %vm201_vm5, 1, %v1451_v3  ;;  %v218_v19 = vsel %vm202_vm6, 1, %v1451_v3  ;;  %v1558_v20 = vld [vmem:[%s2304_s2 + $0x40] sm:$0xff]  ;;  %v1572_v24 = vld [vmem:[%s2304_s2 + $0x48] sm:$0xff]  ;;  %v1577_v25 = vld [vmem:[%s2304_s2 + $0x78] sm:$0xff] }
  0x14   :  { %v1333_v10 = vsel %vm95_vm2, 1.0, %v1452_v8  ;;  %vm203_vm7 = vcmp.eq.s32.totalorder %v1545_v17, 0  ;;  %vm196_vm8 = vcmp.eq.s32.totalorder %v1550_v18, 0  ;;  %vm204_vm9 = vcmp.eq.s32.totalorder %v1558_v20, 0  ;;  %v1586_v28 = vld [vmem:[%s2304_s2 + $0x50] sm:$0xff]  ;;  %v1595_v31 = vld [vmem:[%s2304_s2 + $0x58] sm:$0xff] }
  0x15   :  { %191 = vadd.xlane.f32.xlu0 %v1333_v10  ;;  %v219_v22 = vsel %vm203_vm7, 1, %v1451_v3  ;;  %v212_v23 = vsel %vm196_vm8, 1, %v1451_v3  ;;  %vm209_vm10 = vcmp.eq.s32.totalorder %v1563_v21, 0  ;;  %v220_v26 = vsel %vm204_vm9, 1, %v1451_v3  ;;  %v1606_v34 = vld [vmem:[%s2304_s2 + $0x60] sm:$0xff]  ;;  %v1615_v37 = vld [vmem:[%s2304_s2 + $0x70] sm:$0xff] }
  0x16   :  { %235 = vperm.xlu1 %1383, %v214_v9   ;;  %v225_v27 = vsel %vm209_vm10, 1, %v1451_v3  ;;  %vm205_vm11 = vcmp.eq.s32.totalorder %v1572_v24, 0  ;;  %vm211_vm12 = vcmp.eq.s32.totalorder %v1577_v25, 0  ;;  %vm206_vm13 = vcmp.eq.s32.totalorder %v1586_v28, 0  ;;  %v1640_v49 = vld [vmem:[%s2305_s3 + $0x38] sm:$0xff]   ;;  %v1650_v52 = vld [vmem:[%s2305_s3 + $0x30] sm:$0xff]  }
  0x17   :  { %v221_v29 = vsel %vm205_vm11, 1, %v1451_v3  ;;  %v227_v30 = vsel %vm211_vm12, 1, %v1451_v3  ;;  %v222_v32 = vsel %vm206_vm13, 1, %v1451_v3  ;;  %vm37_vm15 = vcmask 7168   ;;  %1356 = vmatpush3.bf16.msra.mxu0 %v1640_v49  ;;  %v1661_v55 = vld [vmem:[%s2305_s3 + $0x28] sm:$0xff]   ;;  %v1672_v58 = vld [vmem:[%s2305_s3 + $0x20] sm:$0xff]  }
  0x18   :  { %v349_v33 = vsel %vm333_vm14, 1, %v1451_v3  ;;  %vm207_vm0 = vcmp.eq.s32.totalorder %v1595_v31, 0  ;;  %38 = vst.msk [vmem:[#allocation4] sm:$0xff] %vm37_vm15, %v1452_v8  ;;  %vm335_vm1 = vcmp.eq.s32.totalorder %v1510_v7, 1  ;;  %vm208_vm3 = vcmp.eq.s32.totalorder %v1606_v34, 0  ;;  %1357 = vmatprep.subr.bf16.mxu0 %v1452_v8  ;;  %v1683_v61 = vld [vmem:[%s2305_s3 + $0x18] sm:$0xff]  }
  0x19   :  { %v223_v35 = vsel %vm207_vm0, 1, %v1451_v3  ;;  %v351_v36 = vsel %vm335_vm1, 1, %v1451_v3  ;;  %vm337_vm4 = vcmp.eq.s32.totalorder %v1531_v13, 1  ;;  %v224_v38 = vsel %vm208_vm3, 1, %v1451_v3  ;;  %v1694_v1 = vld [vmem:[%s2305_s3 + $0x10] sm:$0xff]   ;;  %v1705_v10 = vld [vmem:[%s2305_s3 + $0x8] sm:$0xff]  }
  0x1a   :  { %238 = vperm.xlu1 %1383, %v215_v12   ;;  %v353_v39 = vsel %vm337_vm4, 1, %v1451_v3  ;;  %vm210_vm5 = vcmp.eq.s32.totalorder %v1615_v37, 0  ;;  %vm339_vm6 = vcmp.eq.s32.totalorder %v1545_v17, 1  ;;  %vm332_vm7 = vcmp.eq.s32.totalorder %v1550_v18, 1  ;;  %s1344_s16 = sld [smem:[#allocation5 + $0x1]]  ;;  %s1456_s18 = smov [#allocation8]  }
  0x1b   :  { %v226_v40 = vsel %vm210_vm5, 1, %v1451_v3  ;;  %v355_v41 = vsel %vm339_vm6, 1, %v1451_v3  ;;  %vm341_vm8 = vcmp.eq.s32.totalorder %v1572_v24, 1  ;;  %v348_v42 = vsel %vm332_vm7, 1, %v1451_v3  ;;  %1358 = vmatpush3.bf16.msra.mxu0 %v1650_v52  ;;  %s1345_s17 = sld [smem:[#allocation5 + $0x2]]  ;;  %s1323_s19 = sshll.u32 %s1456_s18, 4  ;;  %s1324_s19 = int_to_ptr.vmem [resolvable:$true] %s1323_s19 }
  0x1c   :  { %v357_v43 = vsel %vm341_vm8, 1, %v1451_v3  ;;  %vm334_vm9 = vcmp.eq.s32.totalorder %v1493_v2, 1  ;;  %vm343_vm10 = vcmp.eq.s32.totalorder %v1595_v31, 1  ;;  %vm336_vm11 = vcmp.eq.s32.totalorder %v1524_v11, 1  ;;  %1359 = vmatprep.subr.bf16.mxu0 %v1452_v8  ;;  %s1426_s20 = scalar_lea.vmem %s1324_s19, 128  ;;  %p1431_p6 = scmp.lt.s32.totalorder %s1324_s19, %s1324_s19 }
  0x1d   :  { %v350_v44 = vsel %vm334_vm9, 1, %v1451_v3  ;;  %v359_v45 = vsel %vm343_vm10, 1, %v1451_v3  ;;  %vm345_vm12 = vcmp.eq.s32.totalorder %v1563_v21, 1  ;;  %v1453_v46 = vmov -inf   ;;  %p1427_p5 = scmp.ne.s32.totalorder %s1324_s19, %s1426_s20  ;;  %p1432_p7 = scmp.lt.s32.totalorder %s1426_s20, %s1426_s20 }
  0x1e   :  { %241 = vperm.xlu1 %1383, %v216_v14   ;;  %39 = vst [vmem:[#allocation3] sm:$0xff] %v1453_v46  ;;  %v352_v47 = vsel %vm336_vm11, 1, %v1451_v3  ;;  %v361_v48 = vsel %vm345_vm12, 1, %v1451_v3  ;;  %vm338_vm13 = vcmp.eq.s32.totalorder %v1538_v15, 1  ;;  %vm347_vm14 = vcmp.eq.s32.totalorder %v1577_v25, 1 }
  0x1f   :  { %v354_v50 = vsel %vm338_vm13, 1, %v1451_v3  ;;  %v363_v51 = vsel %vm347_vm14, 1, %v1451_v3  ;;  %vm340_vm0 = vcmp.eq.s32.totalorder %v1558_v20, 1  ;;  %vm469_vm1 = vcmp.eq.s32.totalorder %v1488_v0, 2  ;;  %1360 = vmatpush3.bf16.msra.mxu0 %v1661_v55  ;;  %p1433_p8 = por %p1432_p7, %p1431_p6 }
  0x20   :  { %v356_v53 = vsel %vm340_vm0, 1, %v1451_v3  ;;  %v485_v54 = vsel %vm469_vm1, 1, %v1451_v3  ;;  %vm342_vm3 = vcmp.eq.s32.totalorder %v1586_v28, 1  ;;  %vm471_vm4 = vcmp.eq.s32.totalorder %v1510_v7, 2  ;;  %1361 = vmatprep.subr.bf16.mxu0 %v1452_v8  ;;  %vm1342_vm0 = vmpackc.low %vm95_vm2, %vm95_vm2 }
  0x21   :  { %v358_v56 = vsel %vm342_vm3, 1, %v1451_v3  ;;  %v487_v57 = vsel %vm471_vm4, 1, %v1451_v3  ;;  %vm344_vm5 = vcmp.eq.s32.totalorder %v1606_v34, 1  ;;  %vm473_vm6 = vcmp.eq.s32.totalorder %v1531_v13, 2  ;;  %p1434_p9 = pnand %p1433_p8, %p1427_p5 }
  0x22   :  { %244 = vperm.xlu1 %1383, %v217_v16   ;;  %v360_v59 = vsel %vm344_vm5, 1, %v1451_v3  ;;  %v489_v60 = vsel %vm473_vm6, 1, %v1451_v3  ;;  %vm346_vm7 = vcmp.eq.s32.totalorder %v1615_v37, 1  ;;  %vm475_vm8 = vcmp.eq.s32.totalorder %v1545_v17, 2  ;;  %v1716_v16 = vld [vmem:[%s2305_s3] sm:$0xff]  }
  0x23   :  { %1362 = vmatpush3.bf16.msra.mxu0 %v1672_v58  ;;  %v362_v62 = vsel %vm346_vm7, 1, %v1451_v3  ;;  %v491_v63 = vsel %vm475_vm8, 1, %v1451_v3  ;;  %vm468_vm9 = vcmp.eq.s32.totalorder %v1550_v18, 2  ;;  %vm477_vm10 = vcmp.eq.s32.totalorder %v1572_v24, 2 }
  0x24   :  { %1363 = vmatprep.subr.bf16.mxu0 %v1452_v8  ;;  %v484_v5 = vsel %vm468_vm9, 1, %v1451_v3  ;;  %v493_v9 = vsel %vm477_vm10, 1, %v1451_v3  ;;  %vm470_vm11 = vcmp.eq.s32.totalorder %v1493_v2, 2  ;;  %vm479_vm12 = vcmp.eq.s32.totalorder %v1595_v31, 2 }
  0x25   :  { %v486_v12 = vsel %vm470_vm11, 1, %v1451_v3  ;;  %v495_v14 = vsel %vm479_vm12, 1, %v1451_v3  ;;  %vm472_vm13 = vcmp.eq.s32.totalorder %v1524_v11, 2  ;;  %vm481_vm14 = vcmp.eq.s32.totalorder %v1563_v21, 2 }
  0x26   :  { %247 = vperm.xlu1 %1383, %v218_v19   ;;  %v488_v19 = vsel %vm472_vm13, 1, %v1451_v3  ;;  %vm474_vm1 = vcmp.eq.s32.totalorder %v1538_v15, 2  ;;  %vm483_vm3 = vcmp.eq.s32.totalorder %v1577_v25, 2  ;;  %vm1454_vm4 = vmmov 0  }
  0x27   :  { %1364 = vmatpush3.bf16.msra.mxu0 %v1683_v61  ;;  %1371 = vmatprep.mubr.msk.bf16.mxu0 %vm1454_vm4, %v1452_v8  ;;  %v499_v4 = vsel %vm483_vm3, 1, %v1451_v3  ;;  %vm476_vm2 = vcmp.eq.s32.totalorder %v1558_v20, 2  ;;  %vm605_vm5 = vcmp.eq.s32.totalorder %v1488_v0, 3  ;;  %vm478_vm6 = vcmp.eq.s32.totalorder %v1586_v28, 2 }
  0x28   :  { %1365 = vmatprep.subr.bf16.mxu0 %v1452_v8  ;;  %v492_v6 = vsel %vm476_vm2, 1, %v1451_v3  ;;  %vm607_vm7 = vcmp.eq.s32.totalorder %v1510_v7, 3  ;;  %vm480_vm8 = vcmp.eq.s32.totalorder %v1606_v34, 2  ;;  %vm609_vm9 = vcmp.eq.s32.totalorder %v1531_v13, 3 }
  0x29   :  { %vm482_vm10 = vcmp.eq.s32.totalorder %v1615_v37, 2  ;;  %vm611_vm11 = vcmp.eq.s32.totalorder %v1545_v17, 3  ;;  %vm604_vm12 = vcmp.eq.s32.totalorder %v1550_v18, 3  ;;  %vm613_vm13 = vcmp.eq.s32.totalorder %v1572_v24, 3 }
  0x2a   :  { %250 = vperm.xlu1 %1383, %v219_v22   ;;  %v497_v22 = vsel %vm481_vm14, 1, %v1451_v3  ;;  %vm606_vm14 = vcmp.eq.s32.totalorder %v1493_v2, 3  ;;  %vm617_vm3 = vcmp.eq.s32.totalorder %v1563_v21, 3  ;;  %vm610_vm4 = vcmp.eq.s32.totalorder %v1538_v15, 3 }
  0x2b   :  { %229 = vperm.xlu0 %1382, %v212_v23   ;;  %1366 = vmatpush3.bf16.msra.mxu0 %v1694_v1  ;;  %v490_v23 = vsel %vm474_vm1, 1, %v1451_v3  ;;  %vm608_vm1 = vcmp.eq.s32.totalorder %v1524_v11, 3  ;;  %vm619_vm2 = vcmp.eq.s32.totalorder %v1577_v25, 3 }
  0x2c   :  { %1367 = vmatprep.subr.bf16.mxu0 %v1452_v8 }
  0x2e   :  { %253 = vperm.xlu1 %1383, %v220_v26   ;;  %v1455_v26 = vmov 1.0|1.0  }
  0x2f   :  { %268 = vperm.xlu0 %1382, %v225_v27   ;;  %1368 = vmatpush3.bf16.msra.mxu0 %v1705_v10  ;;  %v621_v27 = vsel %vm605_vm5, 1, %v1451_v3  ;;  %vm612_vm5 = vcmp.eq.s32.totalorder %v1558_v20, 3 }
  0x30   :  { %1369 = vmatprep.subr.bf16.mxu0 %v1452_v8  ;;  %v494_v8 = vsel %vm478_vm6, 1, %v1451_v3  ;;  %vm741_vm6 = vcmp.eq.s32.totalorder %v1488_v0, 4 }
  0x32   :  { %256 = vperm.xlu1 %1383, %v221_v29   ;;  %v623_v29 = vsel %vm607_vm7, 1, %v1451_v3  ;;  %vm614_vm7 = vcmp.eq.s32.totalorder %v1586_v28, 3 }
  0x33   :  { %274 = vperm.xlu0 %1382, %v227_v30   ;;  %1370 = vmatpush3.bf16.msra.mxu0 %v1716_v16  ;;  %v496_v30 = vsel %vm480_vm8, 1, %v1451_v3  ;;  %vm743_vm8 = vcmp.eq.s32.totalorder %v1510_v7, 4 }
  0x36   :  { %259 = vperm.xlu1 %1383, %v222_v32   ;;  %1372 = vmatmul.mubr.msk.bf16.vlgmr.msra.gmra.mxu0 %vm1342_vm0, %v1455_v26  ;;  %v625_v32 = vsel %vm609_vm9, 1, %v1451_v3  ;;  %vm615_vm0 = vcmp.eq.s32.totalorder %v1595_v31, 3  ;;  %vm616_vm9 = vcmp.eq.s32.totalorder %v1606_v34, 3 }
  0x37   :  { %368 = vperm.xlu0 %1382, %v349_v33   ;;  %v498_v33 = vsel %vm482_vm10, 1, %v1451_v3  ;;  %vm745_vm10 = vcmp.eq.s32.totalorder %v1531_v13, 4 }
  0x3a   :  { %262 = vperm.xlu1 %1383, %v223_v35   ;;  %v627_v35 = vsel %vm611_vm11, 1, %v1451_v3  ;;  %vm618_vm11 = vcmp.eq.s32.totalorder %v1615_v37, 3 }
  0x3b   :  { %374 = vperm.xlu0 %1382, %v351_v36   ;;  %v620_v36 = vsel %vm604_vm12, 1, %v1451_v3  ;;  %vm747_vm12 = vcmp.eq.s32.totalorder %v1545_v17, 4 }
  0x3e   :  { %265 = vperm.xlu1 %1383, %v224_v38   ;;  %v629_v38 = vsel %vm613_vm13, 1, %v1451_v3  ;;  %vm740_vm13 = vcmp.eq.s32.totalorder %v1550_v18, 4 }
  0x3f   :  { %380 = vperm.xlu0 %1382, %v353_v39   ;;  %v622_v39 = vsel %vm606_vm14, 1, %v1451_v3  ;;  %vm749_vm14 = vcmp.eq.s32.totalorder %v1572_v24, 4 }
  0x42   :  { %271 = vperm.xlu1 %1383, %v226_v40   ;;  %v631_v40 = vsel %vm615_vm0, 1, %v1451_v3  ;;  %vm742_vm0 = vcmp.eq.s32.totalorder %v1493_v2, 4 }
  0x43   :  { %386 = vperm.xlu0 %1382, %v355_v41   ;;  %v624_v41 = vsel %vm608_vm1, 1, %v1451_v3  ;;  %vm751_vm1 = vcmp.eq.s32.totalorder %v1595_v31, 4  ;;  %v758_v26 = vsel %vm742_vm0, 1, %v1451_v3 }
  0x46   :  { %365 = vperm.xlu1 %1383, %v348_v42   ;;  %v633_v42 = vsel %vm617_vm3, 1, %v1451_v3  ;;  %vm753_vm3 = vcmp.eq.s32.totalorder %v1563_v21, 4 }
  0x47   :  { %392 = vperm.xlu0 %1382, %v357_v43  }
  0x4a   :  { %371 = vperm.xlu1 %1383, %v350_v44   ;;  %v626_v44 = vsel %vm610_vm4, 1, %v1451_v3  ;;  %vm746_vm4 = vcmp.eq.s32.totalorder %v1538_v15, 4 }
  0x4b   :  { %398 = vperm.xlu0 %1382, %v359_v45   ;;  %v635_v45 = vsel %vm619_vm2, 1, %v1451_v3  ;;  %vm755_vm2 = vcmp.eq.s32.totalorder %v1577_v25, 4 }
  0x4e   :  { %377 = vperm.xlu1 %1383, %v352_v47   ;;  %v628_v47 = vsel %vm612_vm5, 1, %v1451_v3  ;;  %vm748_vm5 = vcmp.eq.s32.totalorder %v1558_v20, 4 }
  0x4f   :  { %404 = vperm.xlu0 %1382, %v361_v48   ;;  %v757_v48 = vsel %vm741_vm6, 1, %v1451_v3  ;;  %vm877_vm6 = vcmp.eq.s32.totalorder %v1488_v0, 5 }
  0x52   :  { %383 = vperm.xlu1 %1383, %v354_v50  }
  0x53   :  { %410 = vperm.xlu0 %1382, %v363_v51   ;;  %v630_v51 = vsel %vm614_vm7, 1, %v1451_v3  ;;  %vm750_vm7 = vcmp.eq.s32.totalorder %v1586_v28, 4 }
  0x56   :  { %389 = vperm.xlu1 %1383, %v356_v53   ;;  %v759_v53 = vsel %vm743_vm8, 1, %v1451_v3  ;;  %vm879_vm8 = vcmp.eq.s32.totalorder %v1510_v7, 5 }
  0x57   :  { %504 = vperm.xlu0 %1382, %v485_v54  }
  0x5a   :  { %395 = vperm.xlu1 %1383, %v358_v56   ;;  %v632_v56 = vsel %vm616_vm9, 1, %v1451_v3  ;;  %vm752_vm9 = vcmp.eq.s32.totalorder %v1606_v34, 4 }
  0x5b   :  { %510 = vperm.xlu0 %1382, %v487_v57   ;;  %v761_v57 = vsel %vm745_vm10, 1, %v1451_v3  ;;  %vm881_vm10 = vcmp.eq.s32.totalorder %v1531_v13, 5 }
  0x5e   :  { %401 = vperm.xlu1 %1383, %v360_v59   ;;  %v190_v59 = vld [vmem:[#allocation4] sm:$0xff] }
  0x5f   :  { %516 = vperm.xlu0 %1382, %v489_v60  }
  0x62   :  { %407 = vperm.xlu1 %1383, %v362_v62  }
  0x63   :  { %522 = vperm.xlu0 %1382, %v491_v63   ;;  %v634_v63 = vsel %vm618_vm11, 1, %v1451_v3 }
  0x66   :  { %501 = vperm.xlu1 %1383, %v484_v5  }
  0x67   :  { %528 = vperm.xlu0 %1382, %v493_v9   ;;  %v763_v9 = vsel %vm747_vm12, 1, %v1451_v3 }
  0x6a   :  { %507 = vperm.xlu1 %1383, %v486_v12  }
  0x6b   :  { %534 = vperm.xlu0 %1382, %v495_v14   ;;  %v756_v14 = vsel %vm740_vm13, 1, %v1451_v3 }
  0x6e   :  { %513 = vperm.xlu1 %1383, %v488_v19   ;;  %v765_v19 = vsel %vm749_vm14, 1, %v1451_v3 }
  0x6f   :  { %540 = vperm.xlu0 %1382, %v497_v22  }
  0x72   :  { %519 = vperm.xlu1 %1383, %v490_v23  }
  0x73   :  { %546 = vperm.xlu0 %1382, %v499_v4   ;;  %v767_v4 = vsel %vm751_vm1, 1, %v1451_v3 }
  0x76   :  { %525 = vperm.xlu1 %1383, %v492_v6  }
  0x77   :  { %640 = vperm.xlu0 %1382, %v621_v27  }
  0x7a   :  { %531 = vperm.xlu1 %1383, %v494_v8   ;;  %v1809_v8 = vunpack.c.h.bf16 %v1716_v16 }
  0x7b   :  { %646 = vperm.xlu0 %1382, %v623_v29   ;;  %v1812_v29 = vunpack.c.l.bf16 %v1705_v10 }
  0x7e   :  { %537 = vperm.xlu1 %1383, %v496_v30  }
  0x7f   :  { %652 = vperm.xlu0 %1382, %v625_v32   ;;  %v1816_v32 = vunpack.c.h.bf16 %v1705_v10  ;;  %v1834_v10 = vunpack.c.l.bf16 %v1716_v16  ;;  %v762_v16 = vsel %vm746_vm4, 1, %v1451_v3 }
  0x82   :  { %543 = vperm.xlu1 %1383, %v498_v33   ;;  %v1819_v33 = vunpack.c.l.bf16 %v1694_v1 }
  0x83   :  { %658 = vperm.xlu0 %1382, %v627_v35   ;;  %v769_v35 = vsel %vm753_vm3, 1, %v1451_v3  ;;  %vm754_vm3 = vcmp.eq.s32.totalorder %v1615_v37, 4 }
  0x86   :  { %637 = vperm.xlu1 %1383, %v620_v36   ;;  %v1824_v36 = vunpack.c.h.bf16 %v1694_v1  ;;  %v1844_v1 = vunpack.c.h.bf16 %v1650_v52 }
  0x87   :  { %664 = vperm.xlu0 %1382, %v629_v38   ;;  %v1827_v38 = vunpack.c.l.bf16 %v1683_v61 }
  0x8a   :  { %643 = vperm.xlu1 %1383, %v622_v39   ;;  %v1830_v39 = vunpack.c.h.bf16 %v1683_v61  ;;  %v1847_v61 = vunpack.c.h.bf16 %v1672_v58 }
  0x8b   :  { %670 = vperm.xlu0 %1382, %v631_v40  }
  0x8d   :  { %v1760_v43 = vpop.permute.xlu1 %232 }
  0x8e   :  { %649 = vperm.xlu1 %1383, %v624_v41   ;;  %v1837_v41 = vunpack.c.l.bf16 %v1672_v58  ;;  %v1859_v58 = vunpack.c.h.bf16 %v1661_v55  ;;  %vm277_vm12 = vcmp.eq.s32.totalorder %v1760_v43, 1 }
  0x8f   :  { %676 = vperm.xlu0 %1382, %v633_v42   ;;  %v293_v43 = vsel %vm277_vm12, %v1809_v8, -inf }
  0x91   :  { %v1766_v46 = vpop.permute.xlu1 %235 }
  0x92   :  { %655 = vperm.xlu1 %1383, %v626_v44   ;;  %v771_v44 = vsel %vm755_vm2, 1, %v1451_v3  ;;  %vm278_vm1 = vcmp.eq.s32.totalorder %v1766_v46, 1 }
  0x93   :  { %682 = vperm.xlu0 %1382, %v635_v45  }
  0x95   :  { %v1772_v50 = vpop.permute.xlu1 %238 }
  0x96   :  { %661 = vperm.xlu1 %1383, %v628_v47   ;;  %v1856_v47 = vunpack.c.l.bf16 %v1661_v55  ;;  %v895_v55 = vsel %vm879_vm8, 1, %v1451_v3  ;;  %vm279_vm4 = vcmp.eq.s32.totalorder %v1772_v50, 1  ;;  %v294_v50 = vsel %vm278_vm1, %v1812_v29, -inf }
  0x97   :  { %776 = vperm.xlu0 %1382, %v757_v48   ;;  %v764_v48 = vsel %vm748_vm5, 1, %v1451_v3  ;;  %vm887_vm1 = vcmp.eq.s32.totalorder %v1595_v31, 5 }
  0x99   :  { %v1778_v54 = vpop.permute.xlu1 %241 }
  0x9a   :  { %667 = vperm.xlu1 %1383, %v630_v51   ;;  %v893_v51 = vsel %vm877_vm6, 1, %v1451_v3  ;;  %vm280_vm13 = vcmp.eq.s32.totalorder %v1778_v54, 1 }
  0x9b   :  { %782 = vperm.xlu0 %1382, %v759_v53   ;;  %v296_v54 = vsel %vm280_vm13, %v1819_v33, -inf  ;;  %vm876_vm13 = vcmp.eq.s32.totalorder %v1550_v18, 5 }
  0x9d   :  { %v1784_v60 = vpop.permute.xlu1 %244 }
  0x9e   :  { %673 = vperm.xlu1 %1383, %v632_v56   ;;  %v192_v62 = vpop.xlane.xlu0 %191  ;;  %v1866_v56 = vunpack.c.l.bf16 %v1650_v52  ;;  %vm281_vm14 = vcmp.eq.s32.totalorder %v1784_v60, 1 }
  0x9f   :  { %788 = vperm.xlu0 %1382, %v761_v57   ;;  %v193_v5 = vadd.f32 %v192_v62, %v190_v59  ;;  %v766_v57 = vsel %vm750_vm7, 1, %v1451_v3  ;;  %v1870_v59 = vunpack.c.h.bf16 %v1640_v49  ;;  %v768_v62 = vsel %vm752_vm9, 1, %v1451_v3 }
  0xa0   :  { %v297_v60 = vsel %vm281_vm14, %v1824_v36, -inf  ;;  %vm885_vm14 = vcmp.eq.s32.totalorder %v1572_v24, 5 }
  0xa1   :  { %v1790_v12 = vpop.permute.xlu1 %247  ;;  %195 = vst.msk [vmem:[#allocation4] sm:$0xff] %vm37_vm15, %v193_v5  ;;  %vm744_vm15 = vcmp.eq.s32.totalorder %v1524_v11, 4  ;;  %v1876_v5 = vunpack.c.l.bf16 %v1640_v49 }
  0xa2   :  { %679 = vperm.xlu1 %1383, %v634_v63   ;;  %v760_v30 = vsel %vm744_vm15, 1, %v1451_v3  ;;  %v897_v63 = vsel %vm881_vm10, 1, %v1451_v3  ;;  %vm282_vm15 = vcmp.eq.s32.totalorder %v1790_v12, 1  ;;  %vm883_vm10 = vcmp.eq.s32.totalorder %v1545_v17, 5 }
  0xa3   :  { %794 = vperm.xlu0 %1382, %v763_v9  }
  0xa5   :  { %v1797_v22 = vpop.permute.xlu1 %250 }
  0xa6   :  { %773 = vperm.xlu1 %1383, %v756_v14   ;;  %v230_v23 = vpop.permute.xlu0 %229  ;;  %vm283_vm0 = vcmp.eq.s32.totalorder %v1797_v22, 1 }
  0xa7   :  { %800 = vperm.xlu0 %1382, %v765_v19   ;;  %vm276_vm11 = vcmp.eq.s32.totalorder %v230_v23, 1  ;;  %v299_v14 = vsel %vm283_vm0, %v1830_v39, -inf  ;;  %v298_v19 = vsel %vm282_vm15, %v1827_v38, -inf  ;;  %v295_v23 = vsel %vm279_vm4, %v1816_v32, -inf }
  0xa8   :  { %v292_v52 = vsel %vm276_vm11, %v1834_v10, -inf  ;;  %v310_v12 = vmax.f32 %v294_v50, %v298_v19  ;;  %vm878_vm0 = vcmp.eq.s32.totalorder %v1493_v2, 5  ;;  %vm880_vm15 = vcmp.eq.s32.totalorder %v1524_v11, 5 }
  0xa9   :  { %v1803_v6 = vpop.permute.xlu1 %253  ;;  %v308_v22 = vmax.f32 %v292_v52, %v296_v54  ;;  %v899_v54 = vsel %vm883_vm10, 1, %v1451_v3  ;;  %vm882_vm4 = vcmp.eq.s32.totalorder %v1538_v15, 5 }
  0xaa   :  { %779 = vperm.xlu1 %1383, %v758_v26   ;;  %v1806_v27 = vpop.permute.xlu0 %268  ;;  %vm284_vm2 = vcmp.eq.s32.totalorder %v1803_v6, 1 }
  0xab   :  { %806 = vperm.xlu0 %1382, %v767_v4   ;;  %v300_v26 = vsel %vm284_vm2, %v1837_v41, -inf  ;;  %vm289_vm8 = vcmp.eq.s32.totalorder %v1806_v27, 1  ;;  %vm891_vm2 = vcmp.eq.s32.totalorder %v1577_v25, 5 }
  0xac   :  { %v305_v52 = vsel %vm289_vm8, %v1844_v1, -inf }
  0xad   :  { %v257_v40 = vpop.permute.xlu1 %256 }
  0xae   :  { %785 = vperm.xlu1 %1383, %v760_v30   ;;  %v1839_v42 = vpop.permute.xlu0 %274  ;;  %vm285_vm5 = vcmp.eq.s32.totalorder %v257_v40, 1  ;;  %v311_v40 = vmax.f32 %v295_v23, %v299_v14 }
  0xaf   :  { %812 = vperm.xlu0 %1382, %v769_v35   ;;  %v301_v4 = vsel %vm285_vm5, %v1847_v61, -inf  ;;  %v309_v35 = vmax.f32 %v293_v43, %v297_v60  ;;  %vm291_vm11 = vcmp.eq.s32.totalorder %v1839_v42, 1  ;;  %vm884_vm5 = vcmp.eq.s32.totalorder %v1558_v20, 5 }
  0xb0   :  { %v307_v42 = vsel %vm291_vm11, %v1870_v59, -inf  ;;  %vm888_vm11 = vcmp.eq.s32.totalorder %v1606_v34, 5 }
  0xb1   :  { %v260_v45 = vpop.permute.xlu1 %259 }
  0xb2   :  { %791 = vperm.xlu1 %1383, %v762_v16   ;;  %v1863_v53 = vpop.permute.xlu0 %368  ;;  %vm286_vm7 = vcmp.eq.s32.totalorder %v260_v45, 1  ;;  %v312_v45 = vmax.f32 %v308_v22, %v300_v26  ;;  %v892_v26 = vsel %vm876_vm13, 1, %v1451_v3 }
  0xb3   :  { %818 = vperm.xlu0 %1382, %v771_v44   ;;  %v302_v16 = vsel %vm286_vm7, %v1856_v47, -inf  ;;  %vm886_vm7 = vcmp.eq.s32.totalorder %v1586_v28, 5  ;;  %vm413_vm10 = vcmp.eq.s32.totalorder %v1863_v53, 1 }
  0xb4   :  { %v429_v34 = vsel %vm413_vm10, %v1809_v8, -inf }
  0xb5   :  { %v263_v9 = vpop.permute.xlu1 %262 }
  0xb6   :  { %vm287_vm6 = vcmp.eq.s32.totalorder %v263_v9, 1  ;;  %797 = vperm.xlu1 %1383, %v764_v48   ;;  %v1889_v49 = vpop.permute.xlu0 %374  ;;  %v313_v48 = vmax.f32 %v309_v35, %v301_v4  ;;  %v314_v9 = vmax.f32 %v310_v12, %v302_v16  ;;  %v901_v4 = vsel %vm885_vm14, 1, %v1451_v3 }
  0xb7   :  { %912 = vperm.xlu0 %1382, %v893_v51   ;;  %v303_v6 = vsel %vm287_vm6, %v1859_v58, -inf  ;;  %v903_v12 = vsel %vm887_vm1, 1, %v1451_v3  ;;  %vm1013_vm6 = vcmp.eq.s32.totalorder %v1488_v0, 6  ;;  %v900_v0 = vsel %vm884_vm5, 1, %v1451_v3 }
  0xb8   :  { %v315_v51 = vmax.f32 %v311_v40, %v303_v6  ;;  %v317_v14 = vmax.f32 %v313_v48, %v305_v52  ;;  %v894_v40 = vsel %vm878_vm0, 1, %v1451_v3  ;;  %v896_v48 = vsel %vm880_vm15, 1, %v1451_v3 }
  0xb9   :  { %v266_v30 = vpop.permute.xlu1 %265  ;;  %v1029_v28 = vsel %vm1013_vm6, 1, %v1451_v3  ;;  %vm415_vm13 = vcmp.eq.s32.totalorder %v1889_v49, 1 }
  0xba   :  { %vm288_vm9 = vcmp.eq.s32.totalorder %v266_v30, 1  ;;  %803 = vperm.xlu1 %1383, %v766_v57   ;;  %v1906_v46 = vpop.permute.xlu0 %380  ;;  %v319_v19 = vmax.f32 %v315_v51, %v307_v42 }
  0xbb   :  { %v304_v44 = vsel %vm288_vm9, %v1866_v56, -inf  ;;  %918 = vperm.xlu0 %1382, %v895_v55   ;;  %v770_v55 = vsel %vm754_vm3, 1, %v1451_v3  ;;  %vm889_vm3 = vcmp.eq.s32.totalorder %v1563_v21, 5  ;;  %v898_v21 = vsel %vm882_vm4, 1, %v1451_v3 }
  0xbc   :  { %v316_v57 = vmax.f32 %v312_v45, %v304_v44  ;;  %v905_v51 = vsel %vm889_vm3, 1, %v1451_v3  ;;  %vm417_vm8 = vcmp.eq.s32.totalorder %v1906_v46, 1  ;;  %vm1015_vm9 = vcmp.eq.s32.totalorder %v1510_v7, 6 }
  0xbd   :  { %v272_v27 = vpop.permute.xlu1 %271  ;;  %v902_v46 = vsel %vm886_vm7, 1, %v1451_v3  ;;  %v433_v7 = vsel %vm417_vm8, %v1824_v36, -inf  ;;  %v1031_v53 = vsel %vm1015_vm9, 1, %v1451_v3 }
  0xbe   :  { %vm290_vm12 = vcmp.eq.s32.totalorder %v272_v27, 1  ;;  %809 = vperm.xlu1 %1383, %v768_v62   ;;  %v1913_v43 = vpop.permute.xlu0 %386  ;;  %v320_v62 = vmax.f32 %v316_v57, %v317_v14  ;;  %v907_v57 = vsel %vm891_vm2, 1, %v1451_v3  ;;  %vm890_vm2 = vcmp.eq.s32.totalorder %v1615_v37, 5 }
  0xbf   :  { %924 = vperm.xlu0 %1382, %v897_v63   ;;  %v306_v60 = vsel %vm290_vm12, %v1876_v5, -inf  ;;  %vm1017_vm12 = vcmp.eq.s32.totalorder %v1531_v13, 6  ;;  %vm419_vm0 = vcmp.eq.s32.totalorder %v1913_v43, 1 }
  0xc0   :  { %v318_v50 = vmax.f32 %v314_v9, %v306_v60  ;;  %v904_v60 = vsel %vm888_vm11, 1, %v1451_v3  ;;  %v1033_v42 = vsel %vm1017_vm12, 1, %v1451_v3  ;;  %vm1019_vm11 = vcmp.eq.s32.totalorder %v1545_v17, 6 }
  0xc1   :  { %v1922_v22 = vpop.permute.xlu1 %365  ;;  %v906_v17 = vsel %vm890_vm2, 1, %v1451_v3 }
  0xc2   :  { %815 = vperm.xlu1 %1383, %v770_v55   ;;  %v1925_v63 = vpop.permute.xlu0 %392  ;;  %v321_v23 = vmax.f32 %v318_v50, %v319_v19  ;;  %v329_v55 = vld [vmem:[#allocation3] sm:$0x1]  ;;  %vm412_vm1 = vcmp.eq.s32.totalorder %v1922_v22, 1  ;;  %v431_v50 = vsel %vm415_vm13, %v1816_v32, -inf  ;;  %v445_v19 = vmax.f32 %v429_v34, %v433_v7 }
  0xc3   :  { %930 = vperm.xlu0 %1382, %v899_v54   ;;  %vm421_vm15 = vcmp.eq.s32.totalorder %v1925_v63, 1  ;;  %v435_v22 = vsel %vm419_vm0, %v1830_v39, -inf  ;;  %vm1012_vm13 = vcmp.eq.s32.totalorder %v1550_v18, 6  ;;  %v1399_v18 = vld [vmem:[%s2304_s2 + $0x10] sm:$0xff] }
  0xc4   :  { %v322_v6 = vmax.f32 %v320_v62, %v321_v23  ;;  %v428_v62 = vsel %vm412_vm1, %v1834_v10, -inf  ;;  %v437_v63 = vsel %vm421_vm15, %v1847_v61, -inf  ;;  %v1028_v37 = vsel %vm1012_vm13, 1, %v1451_v3 }
  0xc5   :  { %v1930_v30 = vpop.permute.xlu1 %371  ;;  %vm1014_vm0 = vcmp.eq.s32.totalorder %v1399_v18, 6 }
  0xc6   :  { %909 = vperm.xlu1 %1383, %v892_v26   ;;  %v1933_v35 = vpop.permute.xlu0 %398  ;;  %v323_v24 = vrot.slane %v322_v6, 4  ;;  %vm414_vm5 = vcmp.eq.s32.totalorder %v1930_v30, 1 }
  0xc7   :  { %936 = vperm.xlu0 %1382, %v901_v4   ;;  %vm423_vm6 = vcmp.eq.s32.totalorder %v1933_v35, 1  ;;  %v430_v30 = vsel %vm414_vm5, %v1812_v29, -inf }
  0xc8   :  { %v324_v16 = vmax.f32 %v322_v6, %v323_v24  ;;  %v439_v35 = vsel %vm423_vm6, %v1859_v58, -inf }
  0xc9   :  { %v378_v44 = vpop.permute.xlu1 %377 }
  0xca   :  { %915 = vperm.xlu1 %1383, %v894_v40   ;;  %v1939_v2 = vpop.permute.xlu0 %404  ;;  %v325_v45 = vrot.slane %v324_v16, 2  ;;  %vm416_vm14 = vcmp.eq.s32.totalorder %v378_v44, 1 }
  0xcb   :  { %942 = vperm.xlu0 %1382, %v903_v12   ;;  %v432_v43 = vsel %vm416_vm14, %v1819_v33, -inf  ;;  %vm425_vm8 = vcmp.eq.s32.totalorder %v1939_v2, 1  ;;  %v447_v12 = vmax.f32 %v431_v50, %v435_v22  ;;  %v449_v2 = vmax.f32 %v445_v19, %v437_v63 }
  0xcc   :  { %v326_v52 = vmax.f32 %v324_v16, %v325_v45  ;;  %v444_v4 = vmax.f32 %v428_v62, %v432_v43  ;;  %v441_v45 = vsel %vm425_vm8, %v1844_v1, -inf  ;;  %v1030_v19 = vsel %vm1014_vm0, 1, %v1451_v3  ;;  %v1401_v62 = vld [vmem:[%s2304_s2 + $0x20] sm:$0xff] }
  0xcd   :  { %v384_v27 = vpop.permute.xlu1 %383  ;;  %vm1016_vm15 = vcmp.eq.s32.totalorder %v1401_v62, 6 }
  0xce   :  { %921 = vperm.xlu1 %1383, %v896_v48   ;;  %v1945_v11 = vpop.permute.xlu0 %410  ;;  %v327_v9 = vrot.slane %v326_v52, 1  ;;  %vm418_vm3 = vcmp.eq.s32.totalorder %v384_v27, 1 }
  0xcf   :  { %948 = vperm.xlu0 %1382, %v905_v51   ;;  %v434_v49 = vsel %vm418_vm3, %v1827_v38, -inf  ;;  %vm427_vm9 = vcmp.eq.s32.totalorder %v1945_v11, 1 }
  0xd0   :  { %v328_v15 = vmax.f32 %v326_v52, %v327_v9  ;;  %v446_v16 = vmax.f32 %v430_v30, %v434_v49  ;;  %v443_v48 = vsel %vm427_vm9, %v1870_v59, -inf  ;;  %v451_v52 = vmax.f32 %v447_v12, %v439_v35  ;;  %v1402_v49 = vld [vmem:[%s2304_s2 + $0x28] sm:$0xff] }
  0xd1   :  { %v390_v25 = vpop.permute.xlu1 %389  ;;  %vm1153_vm3 = vcmp.eq.s32.totalorder %v1402_v49, 7  ;;  %vm1023_vm9 = vcmp.eq.s32.totalorder %v1595_v31, 6 }
  0xd2   :  { %927 = vperm.xlu1 %1383, %v898_v21   ;;  %v1955_v54 = vpop.permute.xlu0 %504  ;;  %v330_v20 = vmax.f32 %v329_v55, %v328_v15  ;;  %vm420_vm4 = vcmp.eq.s32.totalorder %v390_v25, 1  ;;  %v453_v55 = vmax.f32 %v449_v2, %v441_v45  ;;  %v455_v15 = vmax.f32 %v451_v52, %v443_v48  ;;  %v465_v2 = vld [vmem:[#allocation3 + $0x1] sm:$0x1] }
  0xd3   :  { %954 = vperm.xlu0 %1382, %v907_v57   ;;  %v436_v23 = vsel %vm420_vm4, %v1837_v41, -inf  ;;  %v1035_v57 = vsel %vm1019_vm11, 1, %v1451_v3  ;;  %v1169_v35 = vsel %vm1153_vm3, 1, %v1451_v3  ;;  %v1405_v52 = vld [vmem:[%s2304_s2] sm:$0xff]  ;;  %vm1152_vm11 = vcmp.eq.s32.totalorder %v1401_v62, 7 }
  0xd4   :  { %331 = vst [vmem:[#allocation3] sm:$0x1] %v330_v20  ;;  %v448_v44 = vmax.f32 %v444_v4, %v436_v23  ;;  %v1032_v4 = vsel %vm1016_vm15, 1, %v1451_v3  ;;  %vm1148_vm5 = vcmp.eq.s32.totalorder %v1405_v52, 7  ;;  %v1039_v31 = vsel %vm1023_vm9, 1, %v1451_v3 }
  0xd5   :  { %v396_v13 = vpop.permute.xlu1 %395 }
  0xd6   :  { %933 = vperm.xlu1 %1383, %v900_v0   ;;  %v1971_v14 = vpop.permute.xlu0 %510  ;;  %vm422_vm7 = vcmp.eq.s32.totalorder %v396_v13, 1  ;;  %v1398_v0 = vld [vmem:[%s2304_s2 + $0x8] sm:$0xff] }
  0xd7   :  { %1048 = vperm.xlu0 %1382, %v1029_v28   ;;  %v438_v24 = vsel %vm422_vm7, %v1856_v47, -inf  ;;  %vm1149_vm14 = vcmp.eq.s32.totalorder %v1398_v0, 7  ;;  %vm1150_vm7 = vcmp.eq.s32.totalorder %v1399_v18, 7  ;;  %vm551_vm13 = vcmp.eq.s32.totalorder %v1971_v14, 1 }
  0xd8   :  { %v450_v27 = vmax.f32 %v446_v16, %v438_v24  ;;  %v1165_v34 = vsel %vm1149_vm14, 1, %v1451_v3  ;;  %v2039_v24 = vld [vmem:[%s2304_s2 + $0x30] sm:$0xff]  ;;  %v1168_v0 = vsel %vm1152_vm11, 1, %v1451_v3 }
  0xd9   :  { %v402_v26 = vpop.permute.xlu1 %401  ;;  %vm1018_vm4 = vcmp.eq.s32.totalorder %v2039_v24, 6 }
  0xda   :  { %vm424_vm10 = vcmp.eq.s32.totalorder %v402_v26, 1  ;;  %939 = vperm.xlu1 %1383, %v902_v46   ;;  %v1988_v6 = vpop.permute.xlu0 %516  ;;  %v1034_v45 = vsel %vm1018_vm4, 1, %v1451_v3 }
  0xdb   :  { %v440_v40 = vsel %vm424_vm10, %v1866_v56, -inf  ;;  %1054 = vperm.xlu0 %1382, %v1031_v53   ;;  %vm553_vm8 = vcmp.eq.s32.totalorder %v1988_v6, 1  ;;  %vm549_vm10 = vcmp.eq.s32.totalorder %v1955_v54, 1 }
  0xdc   :  { %v452_v11 = vmax.f32 %v448_v44, %v440_v40  ;;  %v1404_v40 = vld [vmem:[%s2304_s2 + $0x38] sm:$0xff]  ;;  %v569_v6 = vsel %vm553_vm8, %v1824_v36, -inf  ;;  %v565_v54 = vsel %vm549_vm10, %v1809_v8, -inf }
  0xdd   :  { %v408_v51 = vpop.permute.xlu1 %407  ;;  %vm1155_vm2 = vcmp.eq.s32.totalorder %v1404_v40, 7 }
  0xde   :  { %vm426_vm12 = vcmp.eq.s32.totalorder %v408_v51, 1  ;;  %945 = vperm.xlu1 %1383, %v904_v60   ;;  %v1997_v9 = vpop.permute.xlu0 %522  ;;  %v456_v28 = vmax.f32 %v452_v11, %v453_v55  ;;  %v1400_v60 = vld [vmem:[%s2304_s2 + $0x18] sm:$0xff]  ;;  %v1171_v48 = vsel %vm1155_vm2, 1, %v1451_v3  ;;  %vm1154_vm2 = vcmp.eq.s32.totalorder %v2039_v24, 7 }
  0xdf   :  { %v442_v21 = vsel %vm426_vm12, %v1876_v5, -inf  ;;  %1060 = vperm.xlu0 %1382, %v1033_v42   ;;  %vm1151_vm1 = vcmp.eq.s32.totalorder %v1400_v60, 7  ;;  %vm555_vm0 = vcmp.eq.s32.totalorder %v1997_v9, 1 }
  0xe0   :  { %v454_v25 = vmax.f32 %v450_v27, %v442_v21  ;;  %v1167_v22 = vsel %vm1151_vm1, 1, %v1451_v3  ;;  %v1406_v27 = vld [vmem:[%s2304_s2 + $0x48] sm:$0xff] }
  0xe1   :  { %v2005_v20 = vpop.permute.xlu1 %501  ;;  %vm1021_vm6 = vcmp.eq.s32.totalorder %v1406_v27, 6  ;;  %vm1157_vm12 = vcmp.eq.s32.totalorder %v1406_v27, 7 }
  0xe2   :  { %v457_v46 = vmax.f32 %v454_v25, %v455_v15  ;;  %951 = vperm.xlu1 %1383, %v906_v17   ;;  %v2010_v7 = vpop.permute.xlu0 %528  ;;  %v1037_v55 = vsel %vm1021_vm6, 1, %v1451_v3  ;;  %v1166_v15 = vsel %vm1150_vm7, 1, %v1451_v3  ;;  %vm548_vm1 = vcmp.eq.s32.totalorder %v2005_v20, 1 }
  0xe3   :  { %1066 = vperm.xlu0 %1382, %v1035_v57   ;;  %v1164_v57 = vsel %vm1148_vm5, 1, %v1451_v3  ;;  %vm557_vm15 = vcmp.eq.s32.totalorder %v2010_v7, 1  ;;  %v564_v20 = vsel %vm548_vm1, %v1834_v10, -inf }
  0xe4   :  { %v458_v53 = vmax.f32 %v456_v28, %v457_v46  ;;  %v1173_v28 = vsel %vm1157_vm12, 1, %v1451_v3  ;;  %v573_v7 = vsel %vm557_vm15, %v1847_v61, -inf }
  0xe5   :  { %v2017_v13 = vpop.permute.xlu1 %507 }
  0xe6   :  { %v459_v42 = vrot.slane %v458_v53, 4  ;;  %1045 = vperm.xlu1 %1383, %v1028_v37   ;;  %v2022_v50 = vpop.permute.xlu0 %534  ;;  %v567_v37 = vsel %vm551_vm13, %v1816_v32, -inf  ;;  %vm550_vm5 = vcmp.eq.s32.totalorder %v2017_v13, 1 }
  0xe7   :  { %1184 = vperm.xlu0 %1382, %v1165_v34   ;;  %v571_v34 = vsel %vm555_vm0, %v1830_v39, -inf  ;;  %vm559_vm6 = vcmp.eq.s32.totalorder %v2022_v50, 1  ;;  %v566_v50 = vsel %vm550_vm5, %v1812_v29, -inf }
  0xe8   :  { %v460_v43 = vmax.f32 %v458_v53, %v459_v42  ;;  %v581_v53 = vmax.f32 %v565_v54, %v569_v6  ;;  %v583_v62 = vmax.f32 %v567_v37, %v571_v34 }
  0xe9   :  { %v514_v63 = vpop.permute.xlu1 %513 }
  0xea   :  { %v461_v23 = vrot.slane %v460_v43, 2  ;;  %1051 = vperm.xlu1 %1383, %v1030_v19   ;;  %v2032_v26 = vpop.permute.xlu0 %540  ;;  %vm552_vm14 = vcmp.eq.s32.totalorder %v514_v63, 1  ;;  %v575_v19 = vsel %vm559_vm6, %v1859_v58, -inf }
  0xeb   :  { %1190 = vperm.xlu0 %1382, %v1167_v22   ;;  %v568_v9 = vsel %vm552_vm14, %v1819_v33, -inf  ;;  %vm561_vm8 = vcmp.eq.s32.totalorder %v2032_v26, 1  ;;  %v1170_v26 = vsel %vm1154_vm2, 1, %v1451_v3 }
  0xec   :  { %v462_v30 = vmax.f32 %v460_v43, %v461_v23  ;;  %v580_v42 = vmax.f32 %v564_v20, %v568_v9  ;;  %v1407_v23 = vld [vmem:[%s2304_s2 + $0x58] sm:$0xff] }
  0xed   :  { %v520_v12 = vpop.permute.xlu1 %519  ;;  %vm1159_vm11 = vcmp.eq.s32.totalorder %v1407_v23, 7 }
  0xee   :  { %v463_v16 = vrot.slane %v462_v30, 1  ;;  %1057 = vperm.xlu1 %1383, %v1032_v4   ;;  %v2045_v44 = vpop.permute.xlu0 %546  ;;  %vm554_vm3 = vcmp.eq.s32.totalorder %v520_v12, 1  ;;  %v585_v4 = vmax.f32 %v581_v53, %v573_v7  ;;  %v587_v12 = vmax.f32 %v583_v62, %v575_v19  ;;  %v601_v62 = vld [vmem:[#allocation3 + $0x2] sm:$0x1] }
  0xef   :  { %1196 = vperm.xlu0 %1382, %v1169_v35   ;;  %v570_v14 = vsel %vm554_vm3, %v1827_v38, -inf  ;;  %vm563_vm9 = vcmp.eq.s32.totalorder %v2045_v44, 1 }
  0xf0   :  { %v464_v51 = vmax.f32 %v462_v30, %v463_v16  ;;  %v582_v63 = vmax.f32 %v566_v50, %v570_v14  ;;  %v577_v30 = vsel %vm561_vm8, %v1844_v1, -inf  ;;  %v579_v35 = vsel %vm563_vm9, %v1870_v59, -inf }
  0xf1   :  { %v526_v11 = vpop.permute.xlu1 %525  ;;  %v589_v52 = vmax.f32 %v585_v4, %v577_v30  ;;  %v591_v44 = vmax.f32 %v587_v12, %v579_v35  ;;  %v1412_v30 = vld [vmem:[%s2304_s2 + $0x60] sm:$0xff] }
  0xf2   :  { %v466_v21 = vmax.f32 %v465_v2, %v464_v51  ;;  %1063 = vperm.xlu1 %1383, %v1034_v45   ;;  %v2058_v17 = vpop.permute.xlu0 %640  ;;  %vm556_vm4 = vcmp.eq.s32.totalorder %v526_v11, 1  ;;  %v1175_v51 = vsel %vm1159_vm11, 1, %v1451_v3  ;;  %v1408_v11 = vld [vmem:[%s2304_s2 + $0x40] sm:$0xff]  ;;  %vm1024_vm5 = vcmp.eq.s32.totalorder %v1412_v30, 6 }
  0xf3   :  { %1202 = vperm.xlu0 %1382, %v1171_v48   ;;  %v572_v18 = vsel %vm556_vm4, %v1837_v41, -inf  ;;  %vm1020_vm13 = vcmp.eq.s32.totalorder %v1408_v11, 6  ;;  %vm1156_vm15 = vcmp.eq.s32.totalorder %v1408_v11, 7 }
  0xf4   :  { %467 = vst [vmem:[#allocation3 + $0x1] sm:$0x1] %v466_v21  ;;  %v584_v49 = vmax.f32 %v580_v42, %v572_v18  ;;  %v1036_v6 = vsel %vm1020_vm13, 1, %v1451_v3 }
  0xf5   :  { %v532_v25 = vpop.permute.xlu1 %531 }
  0xf6   :  { %1181 = vperm.xlu1 %1383, %v1164_v57   ;;  %v2072_v46 = vpop.permute.xlu0 %646  ;;  %vm558_vm7 = vcmp.eq.s32.totalorder %v532_v25, 1  ;;  %v1409_v57 = vld [vmem:[%s2304_s2 + $0x68] sm:$0xff]  ;;  %v1410_v25 = vld [vmem:[%s2304_s2 + $0x50] sm:$0xff] }
  0xf7   :  { %1072 = vperm.xlu0 %1382, %v1037_v55   ;;  %v574_v43 = vsel %vm558_vm7, %v1856_v47, -inf  ;;  %vm1025_vm14 = vcmp.eq.s32.totalorder %v1409_v57, 6  ;;  %vm1022_vm0 = vcmp.eq.s32.totalorder %v1410_v25, 6  ;;  %vm1161_vm3 = vcmp.eq.s32.totalorder %v1409_v57, 7 }
  0xf8   :  { %v586_v16 = vmax.f32 %v582_v63, %v574_v43  ;;  %v1041_v54 = vsel %vm1025_vm14, 1, %v1451_v3  ;;  %v1038_v9 = vsel %vm1022_vm0, 1, %v1451_v3  ;;  %v1177_v50 = vsel %vm1161_vm3, 1, %v1451_v3 }
  0xf9   :  { %v538_v60 = vpop.permute.xlu1 %537  ;;  %vm1158_vm4 = vcmp.eq.s32.totalorder %v1410_v25, 7  ;;  %vm685_vm7 = vcmp.eq.s32.totalorder %v2058_v17, 1 }
  0xfa   :  { %vm560_vm10 = vcmp.eq.s32.totalorder %v538_v60, 1  ;;  %1187 = vperm.xlu1 %1383, %v1166_v15   ;;  %v2088_v13 = vpop.permute.xlu0 %652  ;;  %v1172_v60 = vsel %vm1156_vm15, 1, %v1451_v3  ;;  %v1174_v63 = vsel %vm1158_vm4, 1, %v1451_v3  ;;  %v701_v17 = vsel %vm685_vm7, %v1809_v8, -inf }
  0xfb   :  { %v576_v22 = vsel %vm560_vm10, %v1866_v56, -inf  ;;  %1078 = vperm.xlu0 %1382, %v1039_v31   ;;  %vm689_vm6 = vcmp.eq.s32.totalorder %v2088_v13, 1  ;;  %vm687_vm10 = vcmp.eq.s32.totalorder %v2072_v46, 1 }
  0xfc   :  { %v588_v2 = vmax.f32 %v584_v49, %v576_v22  ;;  %v2141_v49 = vld [vmem:[#allocation4] sm:$0xff]  ;;  %v705_v13 = vsel %vm689_vm6, %v1824_v36, -inf }
  0xfd   :  { %v544_v40 = vpop.permute.xlu1 %543  ;;  %vm1297_vm8 = vcmp.gt.f32.partialorder %v2141_v49, 0.0 }
  0xfe   :  { %vm562_vm12 = vcmp.eq.s32.totalorder %v544_v40, 1  ;;  %1193 = vperm.xlu1 %1383, %v1168_v0   ;;  %v2103_v45 = vpop.permute.xlu0 %658  ;;  %v592_v55 = vmax.f32 %v588_v2, %v589_v52  ;;  %v1040_v2 = vsel %vm1024_vm5, 1, %v1451_v3 }
  0xff   :  { %v578_v48 = vsel %vm562_vm12, %v1876_v5, -inf  ;;  %1208 = vperm.xlu0 %1382, %v1173_v28   ;;  %v1411_v28 = vld [vmem:[%s2304_s2 + $0x78] sm:$0xff]  ;;  %vm1160_vm12 = vcmp.eq.s32.totalorder %v1412_v30, 7  ;;  %vm691_vm13 = vcmp.eq.s32.totalorder %v2103_v45, 1 }
 0x100   :  { %v590_v27 = vmax.f32 %v586_v16, %v578_v48  ;;  %vm1027_vm1 = vcmp.eq.s32.totalorder %v1411_v28, 6  ;;  %vm1163_vm2 = vcmp.eq.s32.totalorder %v1411_v28, 7  ;;  %v1413_v16 = vld [vmem:[%s2304_s2 + $0x70] sm:$0xff]  ;;  %v1176_v11 = vsel %vm1160_vm12, 1, %v1451_v3  ;;  %s1305_s2 = sld [smem:[#allocation5]] }
 0x101   :  { %v2113_v21 = vpop.permute.xlu1 %637  ;;  %v1043_v20 = vsel %vm1027_vm1, 1, %v1451_v3  ;;  %v1179_v4 = vsel %vm1163_vm2, 1, %v1451_v3  ;;  %vm1026_vm9 = vcmp.eq.s32.totalorder %v1413_v16, 6 }
 0x102   :  { %v593_v24 = vmax.f32 %v590_v27, %v591_v44  ;;  %1199 = vperm.xlu1 %1383, %v1170_v26   ;;  %v2118_v15 = vpop.permute.xlu0 %664  ;;  %v1299_v26 = vsel %vm1297_vm8, 1, %v1451_v3  ;;  %vm684_vm14 = vcmp.eq.s32.totalorder %v2113_v21, 1  ;;  %v703_v44 = vsel %vm687_vm10, %v1816_v32, -inf }
 0x103   :  { %1214 = vperm.xlu0 %1382, %v1175_v51   ;;  %v1042_v51 = vsel %vm1026_vm9, 1, %v1451_v3  ;;  %vm693_vm0 = vcmp.eq.s32.totalorder %v2118_v15, 1  ;;  %v717_v27 = vmax.f32 %v701_v17, %v705_v13  ;;  %v707_v21 = vsel %vm691_vm13, %v1830_v39, -inf }
 0x104   :  { %v594_v31 = vmax.f32 %v592_v55, %v593_v24  ;;  %v700_v57 = vsel %vm684_vm14, %v1834_v10, -inf  ;;  %v709_v55 = vsel %vm693_vm0, %v1847_v61, -inf  ;;  %vm1162_vm8 = vcmp.eq.s32.totalorder %v1413_v16, 7 }
 0x105   :  { %v2125_v0 = vpop.permute.xlu1 %643 }
 0x106   :  { %v595_v37 = vrot.slane %v594_v31, 4  ;;  %1069 = vperm.xlu1 %1383, %v1036_v6   ;;  %v2130_v53 = vpop.permute.xlu0 %670  ;;  %vm686_vm3 = vcmp.eq.s32.totalorder %v2125_v0, 1 }
 0x107   :  { %1084 = vperm.xlu0 %1382, %v1041_v54   ;;  %vm695_vm4 = vcmp.eq.s32.totalorder %v2130_v53, 1  ;;  %v702_v54 = vsel %vm686_vm3, %v1812_v29, -inf }
 0x108   :  { %v596_v34 = vmax.f32 %v594_v31, %v595_v37  ;;  %v711_v25 = vsel %vm695_vm4, %v1859_v58, -inf  ;;  %v719_v37 = vmax.f32 %v703_v44, %v707_v21  ;;  %v737_v21 = vld [vmem:[#allocation3 + $0x3] sm:$0x1] }
 0x109   :  { %v650_v7 = vpop.permute.xlu1 %649 }
 0x10a   :  { %v597_v14 = vrot.slane %v596_v34, 2  ;;  %1075 = vperm.xlu1 %1383, %v1038_v9   ;;  %v2134_v18 = vpop.permute.xlu0 %676  ;;  %vm688_vm11 = vcmp.eq.s32.totalorder %v650_v7, 1 }
 0x10b   :  { %1090 = vperm.xlu0 %1382, %v1043_v20   ;;  %v704_v45 = vsel %vm688_vm11, %v1819_v33, -inf  ;;  %vm697_vm5 = vcmp.eq.s32.totalorder %v2134_v18, 1  ;;  %v723_v18 = vmax.f32 %v719_v37, %v711_v25 }
 0x10c   :  { %v598_v42 = vmax.f32 %v596_v34, %v597_v14  ;;  %v716_v6 = vmax.f32 %v700_v57, %v704_v45  ;;  %v721_v34 = vmax.f32 %v717_v27, %v709_v55  ;;  %v713_v20 = vsel %vm697_vm5, %v1844_v1, -inf  ;;  %v2190_v57 = vpop.f32.mrf.mxu0 }
 0x10d   :  { %v656_v19 = vpop.permute.xlu1 %655 }
 0x10e   :  { %v599_v43 = vrot.slane %v598_v42, 1  ;;  %1205 = vperm.xlu1 %1383, %v1172_v60   ;;  %v2138_v22 = vpop.permute.xlu0 %682  ;;  %vm690_vm1 = vcmp.eq.s32.totalorder %v656_v19, 1 }
 0x10f   :  { %1220 = vperm.xlu0 %1382, %v1177_v50   ;;  %v706_v46 = vsel %vm690_vm1, %v1827_v38, -inf  ;;  %vm699_vm6 = vcmp.eq.s32.totalorder %v2138_v22, 1  ;;  %v725_v22 = vmax.f32 %v721_v34, %v713_v20 }
 0x110   :  { %v600_v23 = vmax.f32 %v598_v42, %v599_v43  ;;  %v718_v53 = vmax.f32 %v702_v54, %v706_v46  ;;  %v715_v7 = vsel %vm699_vm6, %v1870_v59, -inf  ;;  %v1178_v43 = vsel %vm1162_vm8, 1, %v1451_v3 }
 0x111   :  { %v662_v35 = vpop.permute.xlu1 %661 }
 0x112   :  { %v602_v40 = vmax.f32 %v601_v62, %v600_v23  ;;  %1211 = vperm.xlu1 %1383, %v1174_v63   ;;  %v2149_v12 = vpop.permute.xlu0 %776  ;;  %vm692_vm15 = vcmp.eq.s32.totalorder %v662_v35, 1  ;;  %v727_v62 = vmax.f32 %v723_v18, %v715_v7 }
 0x113   :  { %1226 = vperm.xlu0 %1382, %v1179_v4   ;;  %v708_v24 = vsel %vm692_vm15, %v1837_v41, -inf  ;;  %vm821_vm11 = vcmp.eq.s32.totalorder %v2149_v12, 1 }
 0x114   :  { %603 = vst [vmem:[#allocation3 + $0x2] sm:$0x1] %v602_v40  ;;  %v720_v9 = vmax.f32 %v716_v6, %v708_v24  ;;  %v1289_v40 = vmax.f32 %v2141_v49, 1.0  ;;  %v1373_v49 = vpop.f32.mrf.mxu0  ;;  %v837_v25 = vsel %vm821_vm11, %v1809_v8, -inf }
 0x115   :  { %v668_v48 = vpop.permute.xlu1 %667 }
 0x116   :  { %1081 = vperm.xlu1 %1383, %v1040_v2   ;;  %v2164_v52 = vpop.permute.xlu0 %782  ;;  %vm694_vm2 = vcmp.eq.s32.totalorder %v668_v48, 1  ;;  %v185_v6 = vpop.f32.mrf.mxu0 }
 0x117   :  { %1301 = vperm.xlu0 %1382, %v1299_v26   ;;  %v710_v0 = vsel %vm694_vm2, %v1856_v47, -inf  ;;  %vm823_vm12 = vcmp.eq.s32.totalorder %v2164_v52, 1 }
 0x118   :  { %v722_v60 = vmax.f32 %v718_v53, %v710_v0 }
 0x119   :  { %v674_v15 = vpop.permute.xlu1 %673 }
 0x11a   :  { %vm696_vm7 = vcmp.eq.s32.totalorder %v674_v15, 1  ;;  %1087 = vperm.xlu1 %1383, %v1042_v51   ;;  %v789_v31 = vpop.permute.xlu0 %788 }
 0x11b   :  { %v712_v28 = vsel %vm696_vm7, %v1866_v56, -inf  ;;  %vm825_vm10 = vcmp.eq.s32.totalorder %v789_v31, 1  ;;  %v839_v31 = vsel %vm823_vm12, %v1816_v32, -inf }
 0x11c   :  { %v724_v42 = vmax.f32 %v720_v9, %v712_v28  ;;  %v841_v54 = vsel %vm825_vm10, %v1824_v36, -inf  ;;  %v1374_v28 = vpop.f32.mrf.mxu0 }
 0x11d   :  { %v680_v14 = vpop.permute.xlu1 %679  ;;  %v853_v37 = vmax.f32 %v837_v25, %v841_v54 }
 0x11e   :  { %vm698_vm9 = vcmp.eq.s32.totalorder %v680_v14, 1  ;;  %1217 = vperm.xlu1 %1383, %v1176_v11   ;;  %v795_v50 = vpop.permute.xlu0 %794  ;;  %v728_v4 = vmax.f32 %v724_v42, %v725_v22 }
 0x11f   :  { %v714_v19 = vsel %vm698_vm9, %v1876_v5, -inf  ;;  %vm827_vm14 = vcmp.eq.s32.totalorder %v795_v50, 1 }
 0x120   :  { %v726_v63 = vmax.f32 %v722_v60, %v714_v19  ;;  %v843_v53 = vsel %vm827_vm14, %v1830_v39, -inf }
 0x121   :  { %v774_v23 = vpop.permute.xlu1 %773  ;;  %v855_v22 = vmax.f32 %v839_v31, %v843_v53 }
 0x122   :  { %v729_v30 = vmax.f32 %v726_v63, %v727_v62  ;;  %1223 = vperm.xlu1 %1383, %v1178_v43   ;;  %v801_v35 = vpop.permute.xlu0 %800  ;;  %vm820_vm0 = vcmp.eq.s32.totalorder %v774_v23, 1 }
 0x123   :  { %vm829_vm1 = vcmp.eq.s32.totalorder %v801_v35, 1  ;;  %v836_v9 = vsel %vm820_vm0, %v1834_v10, -inf }
 0x124   :  { %v730_v16 = vmax.f32 %v728_v4, %v729_v30  ;;  %v845_v34 = vsel %vm829_vm1, %v1847_v61, -inf }
 0x125   :  { %v780_v2 = vpop.permute.xlu1 %779  ;;  %v857_v23 = vmax.f32 %v853_v37, %v845_v34  ;;  %v873_v37 = vld [vmem:[#allocation3 + $0x4] sm:$0x1] }
 0x126   :  { %v731_v13 = vrot.slane %v730_v16, 4  ;;  %v807_v17 = vpop.permute.xlu0 %806  ;;  %1292 = vperm.xlu1 %1383, %v1289_v40   ;;  %vm822_vm4 = vcmp.eq.s32.totalorder %v780_v2, 1 }
 0x127   :  { %vm831_vm2 = vcmp.eq.s32.totalorder %v807_v17, 1  ;;  %v838_v42 = vsel %vm822_vm4, %v1812_v29, -inf }
 0x128   :  { %v732_v48 = vmax.f32 %v730_v16, %v731_v13  ;;  %v847_v50 = vsel %vm831_vm2, %v1859_v58, -inf }
 0x129   :  { %v786_v26 = vpop.permute.xlu1 %785  ;;  %v859_v40 = vmax.f32 %v855_v22, %v847_v50 }
 0x12a   :  { %v733_v51 = vrot.slane %v732_v48, 2  ;;  %v813_v44 = vpop.permute.xlu0 %812  ;;  %vm824_vm13 = vcmp.eq.s32.totalorder %v786_v26, 1 }
 0x12b   :  { %v840_v52 = vsel %vm824_vm13, %v1819_v33, -inf  ;;  %vm833_vm6 = vcmp.eq.s32.totalorder %v813_v44, 1 }
 0x12c   :  { %v734_v3 = vmax.f32 %v732_v48, %v733_v51  ;;  %v852_v18 = vmax.f32 %v836_v9, %v840_v52  ;;  %v849_v4 = vsel %vm833_vm6, %v1844_v1, -inf }
 0x12d   :  { %v792_v27 = vpop.permute.xlu1 %791  ;;  %v861_v48 = vmax.f32 %v857_v23, %v849_v4 }
 0x12e   :  { %v735_v45 = vrot.slane %v734_v3, 1  ;;  %v819_v11 = vpop.permute.xlu0 %818  ;;  %vm826_vm15 = vcmp.eq.s32.totalorder %v792_v27, 1 }
 0x12f   :  { %v842_v20 = vsel %vm826_vm15, %v1827_v38, -inf  ;;  %vm835_vm7 = vcmp.eq.s32.totalorder %v819_v11, 1 }
 0x130   :  { %v736_v55 = vmax.f32 %v734_v3, %v735_v45  ;;  %v854_v62 = vmax.f32 %v838_v42, %v842_v20  ;;  %v851_v30 = vsel %vm835_vm7, %v1870_v59, -inf }
 0x131   :  { %v798_v46 = vpop.permute.xlu1 %797  ;;  %v863_v26 = vmax.f32 %v859_v40, %v851_v30 }
 0x132   :  { %v738_v24 = vmax.f32 %v737_v21, %v736_v55  ;;  %v2193_v15 = vpop.permute.xlu0 %912  ;;  %vm828_vm3 = vcmp.eq.s32.totalorder %v798_v46, 1 }
 0x133   :  { %v844_v7 = vsel %vm828_vm3, %v1837_v41, -inf  ;;  %vm957_vm11 = vcmp.eq.s32.totalorder %v2193_v15, 1 }
 0x134   :  { %739 = vst [vmem:[#allocation3 + $0x3] sm:$0x1] %v738_v24  ;;  %v856_v63 = vmax.f32 %v852_v18, %v844_v7  ;;  %v973_v7 = vsel %vm957_vm11, %v1809_v8, -inf }
 0x135   :  { %v804_v0 = vpop.permute.xlu1 %803 }
 0x136   :  { %v2198_v12 = vpop.permute.xlu0 %918  ;;  %vm830_vm5 = vcmp.eq.s32.totalorder %v804_v0, 1 }
 0x137   :  { %v846_v19 = vsel %vm830_vm5, %v1856_v47, -inf  ;;  %vm959_vm12 = vcmp.eq.s32.totalorder %v2198_v12, 1 }
 0x138   :  { %v858_v16 = vmax.f32 %v854_v62, %v846_v19  ;;  %v975_v15 = vsel %vm959_vm12, %v1816_v32, -inf }
 0x139   :  { %v810_v14 = vpop.permute.xlu1 %809 }
 0x13a   :  { %vm832_vm8 = vcmp.eq.s32.totalorder %v810_v14, 1  ;;  %v925_v60 = vpop.permute.xlu0 %924 }
 0x13b   :  { %v848_v43 = vsel %vm832_vm8, %v1866_v56, -inf  ;;  %vm961_vm10 = vcmp.eq.s32.totalorder %v925_v60, 1 }
 0x13c   :  { %v860_v2 = vmax.f32 %v856_v63, %v848_v43  ;;  %v977_v20 = vsel %vm961_vm10, %v1824_v36, -inf }
 0x13d   :  { %v816_v35 = vpop.permute.xlu1 %815  ;;  %v989_v60 = vmax.f32 %v973_v7, %v977_v20 }
 0x13e   :  { %vm834_vm9 = vcmp.eq.s32.totalorder %v816_v35, 1  ;;  %v931_v13 = vpop.permute.xlu0 %930  ;;  %v864_v3 = vmax.f32 %v860_v2, %v861_v48 }
 0x13f   :  { %v850_v17 = vsel %vm834_vm9, %v1876_v5, -inf  ;;  %vm963_vm14 = vcmp.eq.s32.totalorder %v931_v13, 1 }
 0x140   :  { %v862_v51 = vmax.f32 %v858_v16, %v850_v17  ;;  %v979_v12 = vsel %vm963_vm14, %v1830_v39, -inf }
 0x141   :  { %v910_v44 = vpop.permute.xlu1 %909  ;;  %v991_v16 = vmax.f32 %v975_v15, %v979_v12 }
 0x142   :  { %v865_v27 = vmax.f32 %v862_v51, %v863_v26  ;;  %v937_v45 = vpop.permute.xlu0 %936  ;;  %vm956_vm0 = vcmp.eq.s32.totalorder %v910_v44, 1 }
 0x143   :  { %vm965_vm1 = vcmp.eq.s32.totalorder %v937_v45, 1  ;;  %v972_v50 = vsel %vm956_vm0, %v1834_v10, -inf }
 0x144   :  { %v866_v11 = vmax.f32 %v864_v3, %v865_v27  ;;  %v981_v19 = vsel %vm965_vm1, %v1847_v61, -inf }
 0x145   :  { %v916_v21 = vpop.permute.xlu1 %915  ;;  %v993_v17 = vmax.f32 %v989_v60, %v981_v19  ;;  %v1009_v60 = vld [vmem:[#allocation3 + $0x5] sm:$0x1] }
 0x146   :  { %v867_v55 = vrot.slane %v866_v11, 4  ;;  %v943_v46 = vpop.permute.xlu0 %942  ;;  %vm958_vm4 = vcmp.eq.s32.totalorder %v916_v21, 1 }
 0x147   :  { %vm967_vm2 = vcmp.eq.s32.totalorder %v943_v46, 1  ;;  %v974_v4 = vsel %vm958_vm4, %v1812_v29, -inf }
 0x148   :  { %v868_v49 = vmax.f32 %v866_v11, %v867_v55  ;;  %v983_v30 = vsel %vm967_vm2, %v1859_v58, -inf }
 0x149   :  { %v922_v24 = vpop.permute.xlu1 %921  ;;  %v995_v44 = vmax.f32 %v991_v16, %v983_v30 }
 0x14a   :  { %v869_v6 = vrot.slane %v868_v49, 2  ;;  %v949_v54 = vpop.permute.xlu0 %948  ;;  %vm960_vm13 = vcmp.eq.s32.totalorder %v922_v24, 1 }
 0x14b   :  { %v976_v42 = vsel %vm960_vm13, %v1819_v33, -inf  ;;  %vm969_vm6 = vcmp.eq.s32.totalorder %v949_v54, 1 }
 0x14c   :  { %v870_v25 = vmax.f32 %v868_v49, %v869_v6  ;;  %v988_v63 = vmax.f32 %v972_v50, %v976_v42  ;;  %v985_v48 = vsel %vm969_vm6, %v1844_v1, -inf }
 0x14d   :  { %v928_v0 = vpop.permute.xlu1 %927  ;;  %v997_v21 = vmax.f32 %v993_v17, %v985_v48 }
 0x14e   :  { %v871_v28 = vrot.slane %v870_v25, 1  ;;  %v955_v31 = vpop.permute.xlu0 %954  ;;  %vm962_vm15 = vcmp.eq.s32.totalorder %v928_v0, 1 }
 0x14f   :  { %v978_v43 = vsel %vm962_vm15, %v1827_v38, -inf  ;;  %vm971_vm7 = vcmp.eq.s32.totalorder %v955_v31, 1 }
 0x150   :  { %v872_v52 = vmax.f32 %v870_v25, %v871_v28  ;;  %v990_v2 = vmax.f32 %v974_v4, %v978_v43  ;;  %v987_v26 = vsel %vm971_vm7, %v1870_v59, -inf }
 0x151   :  { %v934_v53 = vpop.permute.xlu1 %933  ;;  %v999_v55 = vmax.f32 %v995_v44, %v987_v26 }
 0x152   :  { %v874_v9 = vmax.f32 %v873_v37, %v872_v52  ;;  %v2215_v34 = vpop.permute.xlu0 %1048  ;;  %vm964_vm3 = vcmp.eq.s32.totalorder %v934_v53, 1 }
 0x153   :  { %v980_v22 = vsel %vm964_vm3, %v1837_v41, -inf  ;;  %vm1093_vm12 = vcmp.eq.s32.totalorder %v2215_v34, 1 }
 0x154   :  { %875 = vst [vmem:[#allocation3 + $0x4] sm:$0x1] %v874_v9  ;;  %v992_v13 = vmax.f32 %v988_v63, %v980_v22  ;;  %v1109_v48 = vsel %vm1093_vm12, %v1809_v8, -inf }
 0x155   :  { %v940_v14 = vpop.permute.xlu1 %939 }
 0x156   :  { %v2220_v18 = vpop.permute.xlu0 %1054  ;;  %vm966_vm5 = vcmp.eq.s32.totalorder %v940_v14, 1 }
 0x157   :  { %v982_v35 = vsel %vm966_vm5, %v1856_v47, -inf  ;;  %vm1095_vm13 = vcmp.eq.s32.totalorder %v2220_v18, 1 }
 0x158   :  { %v994_v3 = vmax.f32 %v990_v2, %v982_v35  ;;  %v1111_v26 = vsel %vm1095_vm13, %v1816_v32, -inf }
 0x159   :  { %v946_v62 = vpop.permute.xlu1 %945 }
 0x15a   :  { %vm968_vm8 = vcmp.eq.s32.totalorder %v946_v62, 1  ;;  %v1061_v23 = vpop.permute.xlu0 %1060 }
 0x15b   :  { %v984_v40 = vsel %vm968_vm8, %v1866_v56, -inf  ;;  %vm1097_vm10 = vcmp.eq.s32.totalorder %v1061_v23, 1 }
 0x15c   :  { %v996_v27 = vmax.f32 %v992_v13, %v984_v40  ;;  %v1113_v2 = vsel %vm1097_vm10, %v1824_v36, -inf }
 0x15d   :  { %v952_v51 = vpop.permute.xlu1 %951 }
 0x15e   :  { %vm970_vm9 = vcmp.eq.s32.totalorder %v952_v51, 1  ;;  %v1067_v45 = vpop.permute.xlu0 %1066  ;;  %v1000_v24 = vmax.f32 %v996_v27, %v997_v21  ;;  %v1125_v51 = vmax.f32 %v1109_v48, %v1113_v2 }
 0x15f   :  { %v986_v11 = vsel %vm970_vm9, %v1876_v5, -inf  ;;  %vm1099_vm11 = vcmp.eq.s32.totalorder %v1067_v45, 1 }
 0x160   :  { %v998_v46 = vmax.f32 %v994_v3, %v986_v11  ;;  %v1115_v17 = vsel %vm1099_vm11, %v1830_v39, -inf }
 0x161   :  { %v1046_v49 = vpop.permute.xlu1 %1045  ;;  %v1127_v18 = vmax.f32 %v1111_v26, %v1115_v17 }
 0x162   :  { %v1001_v6 = vmax.f32 %v998_v46, %v999_v55  ;;  %v1185_v54 = vpop.permute.xlu0 %1184  ;;  %vm1092_vm0 = vcmp.eq.s32.totalorder %v1046_v49, 1 }
 0x163   :  { %vm1229_vm15 = vcmp.eq.s32.totalorder %v1185_v54, 1  ;;  %v1108_v44 = vsel %vm1092_vm0, %v1834_v10, -inf }
 0x164   :  { %v1002_v25 = vmax.f32 %v1000_v24, %v1001_v6  ;;  %v2258_v45 = vsel %vm1229_vm15, %v1809_v8, -inf }
 0x165   :  { %v1052_v0 = vpop.permute.xlu1 %1051 }
 0x166   :  { %v1003_v28 = vrot.slane %v1002_v25, 4  ;;  %v1191_v31 = vpop.permute.xlu0 %1190  ;;  %vm1094_vm4 = vcmp.eq.s32.totalorder %v1052_v0, 1 }
 0x167   :  { %vm1231_vm2 = vcmp.eq.s32.totalorder %v1191_v31, 1  ;;  %v1110_v21 = vsel %vm1094_vm4, %v1812_v29, -inf }
 0x168   :  { %v1004_v37 = vmax.f32 %v1002_v25, %v1003_v28  ;;  %v1247_v55 = vsel %vm1231_vm2, %v1816_v32, -inf }
 0x169   :  { %v1058_v52 = vpop.permute.xlu1 %1057 }
 0x16a   :  { %v1005_v53 = vrot.slane %v1004_v37, 2  ;;  %v1197_v9 = vpop.permute.xlu0 %1196  ;;  %vm1096_vm14 = vcmp.eq.s32.totalorder %v1058_v52, 1 }
 0x16b   :  { %vm1233_vm1 = vcmp.eq.s32.totalorder %v1197_v9, 1  ;;  %v1112_v34 = vsel %vm1096_vm14, %v1819_v33, -inf }
 0x16c   :  { %v1006_v20 = vmax.f32 %v1004_v37, %v1005_v53  ;;  %v2255_v3 = vsel %vm1233_vm1, %v1824_v36, -inf  ;;  %v1124_v46 = vmax.f32 %v1108_v44, %v1112_v34 }
 0x16d   :  { %v1064_v7 = vpop.permute.xlu1 %1063  ;;  %v1261_v49 = vmax.f32 %v2258_v45, %v2255_v3 }
 0x16e   :  { %v1007_v14 = vrot.slane %v1006_v20, 1  ;;  %v1203_v15 = vpop.permute.xlu0 %1202  ;;  %vm1098_vm3 = vcmp.eq.s32.totalorder %v1064_v7, 1 }
 0x16f   :  { %v1114_v11 = vsel %vm1098_vm3, %v1827_v38, -inf  ;;  %vm1235_vm8 = vcmp.eq.s32.totalorder %v1203_v15, 1 }
 0x170   :  { %v1008_v42 = vmax.f32 %v1006_v20, %v1007_v14  ;;  %v1126_v24 = vmax.f32 %v1110_v21, %v1114_v11  ;;  %v1251_v0 = vsel %vm1235_vm8, %v1830_v39, -inf }
 0x171   :  { %v1182_v12 = vpop.permute.xlu1 %1181 }
 0x172   :  { %v1010_v50 = vmax.f32 %v1009_v60, %v1008_v42  ;;  %v1073_v19 = vpop.permute.xlu0 %1072  ;;  %vm1228_vm9 = vcmp.eq.s32.totalorder %v1182_v12, 1 }
 0x173   :  { %vm1101_vm5 = vcmp.eq.s32.totalorder %v1073_v19, 1  ;;  %v1244_v32 = vsel %vm1228_vm9, %v1834_v10, -inf }
 0x174   :  { %1011 = vst [vmem:[#allocation3 + $0x5] sm:$0x1] %v1010_v50  ;;  %v1117_v36 = vsel %vm1101_vm5, %v1847_v61, -inf }
 0x175   :  { %v2236_v43 = vpop.permute.xlu1 %1187  ;;  %v1129_v28 = vmax.f32 %v1125_v51, %v1117_v36 }
 0x176   :  { %v1079_v22 = vpop.permute.xlu0 %1078  ;;  %vm1230_vm2 = vcmp.eq.s32.totalorder %v2236_v43, 1 }
 0x177   :  { %vm1103_vm6 = vcmp.eq.s32.totalorder %v1079_v22, 1  ;;  %v1246_v2 = vsel %vm1230_vm2, %v1812_v29, -inf }
 0x178   :  { %v1119_v8 = vsel %vm1103_vm6, %v1859_v58, -inf }
 0x179   :  { %v1194_v62 = vpop.permute.xlu1 %1193  ;;  %v1131_v52 = vmax.f32 %v1127_v18, %v1119_v8 }
 0x17a   :  { %v2238_v63 = vpop.permute.xlu0 %1208  ;;  %vm1232_vm11 = vcmp.eq.s32.totalorder %v1194_v62, 1 }
 0x17b   :  { %v1248_v53 = vsel %vm1232_vm11, %v1819_v33, -inf  ;;  %vm1237_vm0 = vcmp.eq.s32.totalorder %v2238_v63, 1 }
 0x17c   :  { %v1260_v33 = vmax.f32 %v1244_v32, %v1248_v53  ;;  %v1253_v15 = vsel %vm1237_vm0, %v1847_v61, -inf }
 0x17d   :  { %v2240_v4 = vpop.permute.xlu1 %1199  ;;  %v1265_v17 = vmax.f32 %v1261_v49, %v1253_v15 }
 0x17e   :  { %v2242_v30 = vpop.permute.xlu0 %1214  ;;  %vm1234_vm1 = vcmp.eq.s32.totalorder %v2240_v4, 1 }
 0x17f   :  { %vm1239_vm15 = vcmp.eq.s32.totalorder %v2242_v30, 1  ;;  %v1250_v22 = vsel %vm1234_vm1, %v1827_v38, -inf }
 0x180   :  { %v1255_v62 = vsel %vm1239_vm15, %v1859_v58, -inf }
 0x181   :  { %v1070_v35 = vpop.permute.xlu1 %1069 }
 0x182   :  { %v1085_v40 = vpop.permute.xlu0 %1084  ;;  %vm1100_vm7 = vcmp.eq.s32.totalorder %v1070_v35, 1 }
 0x183   :  { %v1116_v6 = vsel %vm1100_vm7, %v1837_v41, -inf  ;;  %vm1105_vm12 = vcmp.eq.s32.totalorder %v1085_v40, 1 }
 0x184   :  { %v1128_v9 = vmax.f32 %v1124_v46, %v1116_v6  ;;  %v1121_v39 = vsel %vm1105_vm12, %v1844_v1, -inf }
 0x185   :  { %v1076_v16 = vpop.permute.xlu1 %1075  ;;  %v1133_v12 = vmax.f32 %v1129_v28, %v1121_v39 }
 0x186   :  { %v1091_v23 = vpop.permute.xlu0 %1090  ;;  %vm1102_vm10 = vcmp.eq.s32.totalorder %v1076_v16, 1  ;;  %v1263_v16 = vmax.f32 %v1247_v55, %v1251_v0 }
 0x187   :  { %vm1107_vm13 = vcmp.eq.s32.totalorder %v1091_v23, 1  ;;  %v1118_v31 = vsel %vm1102_vm10, %v1856_v47, -inf }
 0x188   :  { %v1123_v20 = vsel %vm1107_vm13, %v1870_v59, -inf  ;;  %v1130_v7 = vmax.f32 %v1126_v24, %v1118_v31 }
 0x189   :  { %v2247_v13 = vpop.permute.xlu1 %1205  ;;  %v1135_v50 = vmax.f32 %v1131_v52, %v1123_v20  ;;  %v1310_v52 = vstv %s1344_s16 }
 0x18a   :  { %v1221_v54 = vpop.permute.xlu0 %1220  ;;  %vm1236_vm3 = vcmp.eq.s32.totalorder %v2247_v13, 1  ;;  %v1262_v13 = vmax.f32 %v1246_v2, %v1250_v22 }
 0x18b   :  { %v1252_v63 = vsel %vm1236_vm3, %v1837_v41, -inf  ;;  %vm1241_vm6 = vcmp.eq.s32.totalorder %v1221_v54, 1  ;;  %v1267_v41 = vmax.f32 %v1263_v16, %v1255_v62  ;;  %v1281_v54 = vld [vmem:[#allocation3 + $0x7] sm:$0x1] }
 0x18c   :  { %v1264_v30 = vmax.f32 %v1260_v33, %v1252_v63  ;;  %v1257_v48 = vsel %vm1241_vm6, %v1844_v1, -inf }
 0x18d   :  { %v1212_v27 = vpop.permute.xlu1 %1211  ;;  %v1269_v43 = vmax.f32 %v1265_v17, %v1257_v48 }
 0x18e   :  { %v1227_v60 = vpop.permute.xlu0 %1226  ;;  %vm1238_vm5 = vcmp.eq.s32.totalorder %v1212_v27, 1 }
 0x18f   :  { %vm1243_vm7 = vcmp.eq.s32.totalorder %v1227_v60, 1  ;;  %v1254_v4 = vsel %vm1238_vm5, %v1856_v47, -inf }
 0x190   :  { %v1259_v26 = vsel %vm1243_vm7, %v1870_v59, -inf  ;;  %v1266_v51 = vmax.f32 %v1262_v13, %v1254_v4  ;;  %v1145_v59 = vld [vmem:[#allocation3 + $0x6] sm:$0x1] }
 0x191   :  { %v1082_v25 = vpop.permute.xlu1 %1081  ;;  %v1271_v47 = vmax.f32 %v1267_v41, %v1259_v26 }
 0x192   :  { %vm1104_vm14 = vcmp.eq.s32.totalorder %v1082_v25, 1  ;;  %v1302_v28 = vpop.permute.xlu0 %1301 }
 0x193   :  { %v1120_v37 = vsel %vm1104_vm14, %v1866_v56, -inf  ;;  %vm1303_vm10 = vcmp.eq.s32.totalorder %v1302_v28, 1 }
 0x194   :  { %v1132_v14 = vmax.f32 %v1128_v9, %v1120_v37  ;;  %v1308_v37 = vstv %s1305_s2  ;;  %v1313_v9 = vstv %s1345_s17 }
 0x195   :  { %v1088_v10 = vpop.permute.xlu1 %1087 }
 0x196   :  { %vm1106_vm4 = vcmp.eq.s32.totalorder %v1088_v10, 1  ;;  %v1136_v61 = vmax.f32 %v1132_v14, %v1133_v12 }
 0x197   :  { %v1122_v42 = vsel %vm1106_vm4, %v1876_v5, -inf }
 0x198   :  { %v1134_v19 = vmax.f32 %v1130_v7, %v1122_v42  ;;  %v1314_v7 = vmul.f32 %v1313_v9, %v2190_v57 }
 0x199   :  { %v1218_v35 = vpop.permute.xlu1 %1217 }
 0x19a   :  { %v1137_v40 = vmax.f32 %v1134_v19, %v1135_v50  ;;  %vm1240_vm8 = vcmp.eq.s32.totalorder %v1218_v35, 1 }
 0x19b   :  { %v1256_v38 = vsel %vm1240_vm8, %v1866_v56, -inf }
 0x19c   :  { %v1138_v58 = vmax.f32 %v1136_v61, %v1137_v40  ;;  %v1268_v18 = vmax.f32 %v1264_v30, %v1256_v38 }
 0x19d   :  { %v1224_v23 = vpop.permute.xlu1 %1223 }
 0x19e   :  { %v1139_v34 = vrot.slane %v1138_v58, 4  ;;  %vm1242_vm9 = vcmp.eq.s32.totalorder %v1224_v23, 1  ;;  %v1272_v27 = vmax.f32 %v1268_v18, %v1269_v43 }
 0x19f   :  { %v1258_v29 = vsel %vm1242_vm9, %v1876_v5, -inf }
 0x1a0   :  { %v1140_v44 = vmax.f32 %v1138_v58, %v1139_v34  ;;  %v1270_v56 = vmax.f32 %v1266_v51, %v1258_v29 }
 0x1a1   :  { %v1293_v46 = vpop.permute.xlu1 %1292 }
 0x1a2   :  { %v1141_v3 = vrot.slane %v1140_v44, 2  ;;  %v1273_v45 = vmax.f32 %v1270_v56, %v1271_v47  ;;  %1396 = vrcp.f32 %v1293_v46 }
 0x1a4   :  { %v1142_v11 = vmax.f32 %v1140_v44, %v1141_v3  ;;  %v1274_v21 = vmax.f32 %v1272_v27, %v1273_v45 }
 0x1a6   :  { %v1143_v55 = vrot.slane %v1142_v11, 1  ;;  %v1275_v1 = vrot.slane %v1274_v21, 4 }
 0x1a8   :  { %v1144_v49 = vmax.f32 %v1142_v11, %v1143_v55  ;;  %v1276_v36 = vmax.f32 %v1274_v21, %v1275_v1 }
 0x1aa   :  { %v1146_v24 = vmax.f32 %v1145_v59, %v1144_v49  ;;  %v1277_v8 = vrot.slane %v1276_v36, 2 }
 0x1ac   :  { %1147 = vst [vmem:[#allocation3 + $0x6] sm:$0x1] %v1146_v24  ;;  %v1278_v5 = vmax.f32 %v1276_v36, %v1277_v8 }
 0x1ae   :  { %v1279_v6 = vrot.slane %v1278_v5, 1 }
 0x1af   :  { %v1397_v32 = vpop.eup %1396 }
 0x1b0   :  { %v1280_v25 = vmax.f32 %v1278_v5, %v1279_v6  ;;  %v1296_v31 = vmul.f32 %v1397_v32, %v2190_v57 }
 0x1b2   :  { %v1282_v0 = vmax.f32 %v1281_v54, %v1280_v25  ;;  %v1309_v20 = vmul.f32 %v1308_v37, %v1296_v31 }
 0x1b4   :  { %1283 = vst [vmem:[#allocation3 + $0x7] sm:$0x1] %v1282_v0 }
 0x1bb   :  { %v1298_v53 = vld [vmem:[#allocation3] sm:$0xff] }
 0x1bc   :  { %v1304_v39 = vsel %vm1303_vm10, %v1298_v53, 0.0 }
 0x1bd   :  { %v1311_v10 = vmul.f32 %v1310_v52, %v1304_v39 }
 0x1bf   :  { %v1312_v14 = vadd.f32 %v1311_v10, %v1309_v20 }
 0x1c1   :  { %v1315_v33 = vadd.f32 %v1314_v7, %v1312_v14 }
 0x1c3   :  { %1316 = vst [vmem:[#allocation8] sm:$0xff] %v1315_v33 }
 0x1c4   :  { %1437 = shalt.err (!%p1434_p9)
}
 0x1c5   :  { %1326 = dma.vmem_to_hbm [thread:$0]  %s1324_s19, 128, %s2306_s4, [#allocation6]  }
 0x1c6   :  { %1448 = dma.done.wait [#allocation6], 128  }
 0x1c7   :  { %1449 = vsyncadd [#allocation6], 4294967168 }
 0x1c8   :  { %1330 = vsyncpa [#allocation6], 1 }
 0x1c9   :  { %1331 = vsyncpa [#allocation7], 1 }

</bundles_post_ra>
